<compile_context>
chip_gen: v5e
topology: v5e:2x2
jax: 0.10.0
libtpu: 0.0.40
codegen_flags: <defaults>
</compile_context>

<pallas_src>
import jax
import jax.numpy as jnp
from jax import lax
from jax.experimental import pallas as pl
from jax.experimental.pallas import tpu as pltpu

_MC = 32  # centers processed per chunk (multiple of 8 sublanes)


def _round_up(v: int, m: int) -> int:
    return ((v + m - 1) // m) * m


def _choose_tn(n: int, *, max_tn: int = 2048, min_tn: int = 256) -> int:
    """Pick the point-tile size: multiple of 128, large enough to amortize the
    per-grid-step overhead, small enough to keep >= ~4 parallel grid steps."""
    n128 = _round_up(max(n, 1), 128)
    tn = (n128 // 4) // 128 * 128          # aim for ~4 steps
    return max(min_tn, min(max_tn, tn))


def _rbf_poly_kernel(x_ref, c_ref, wr_ref, wp_ref, o_ref):
    # x_ref : (D, TN)     transposed tile of evaluation points (lane-dense)
    # c_ref : (M_pad, D)  RBF centers, zero-padded along M to a multiple of _MC
    # wr_ref: (M_pad, 1)  RBF coefficients (zero in padded rows)
    # wp_ref: (1+D,)      polynomial coefficients in SMEM: [bias, linear terms]
    # o_ref : (1, TN)     lane-dense output row
    x = x_ref[...]                                   # (D, TN) float32
    D, tn = x.shape
    m_pad = c_ref.shape[0]
    n_chunks = m_pad // _MC

    # Degree-1 polynomial tail doubles as the accumulator init (saves a zero-init
    # pass and the separate poly add at the end): acc = w0 + sum_d w_{1+d} * x_d.
    acc = wp_ref[0] + wp_ref[1] * x[0:1, :]          # (1, TN)
    for d in range(1, D):                            # D is tiny & static
        acc = acc + wp_ref[1 + d] * x[d:d + 1, :]
    # TODO(synk): polynomial tails of degree > 1 (higher-order monomial bases)
    # are not implemented; the module's default degree=1 is what this covers.

    def chunk(k, acc):
        # Process _MC centers at a time so every intermediate stays vreg-sized;
        # no (M_pad, TN) temporary is ever materialized to VMEM.
        start = pl.multiple_of(k * _MC, _MC)
        c = c_ref[pl.ds(start, _MC), :]              # (MC, D)
        wr = wr_ref[pl.ds(start, _MC), :]            # (MC, 1)
        # Squared distances on the VPU (no MXU push for a K=D contraction, and no
        # ||x||^2 + ||c||^2 - 2 x.c cancellation near x ~= c):
        diff = c[:, 0:1] - x[0:1, :]                 # (MC, TN) via broadcasts
        r2 = diff * diff
        for d in range(1, D):
            diff = c[:, d:d + 1] - x[d:d + 1, :]
            r2 = r2 + diff * diff
        # Polyharmonic spline order 3: phi = r^3 = r2 * sqrt(r2) (sqrt -> EUP),
        # exactly 0 at r2 == 0 (padded centers / query == center), never NaN.
        phi = r2 * jnp.sqrt(r2)
        # Fold the coefficient multiply into the chunk, reduce over sublanes (XLU).
        return acc + jnp.sum(phi * wr, axis=0, keepdims=True)

    acc = lax.fori_loop(0, n_chunks, chunk, acc, unroll=(n_chunks <= 8))
    o_ref[...] = acc.astype(o_ref.dtype)


def make_rbf_poly_forward(centers, coefs_rbf, coefs_poly, *, max_tn=2048):
    """Build a forward fn for RBF_Poly with fixed centers/coefficients.

    centers: (M, D), coefs_rbf: (M, 1), coefs_poly: (1+D, 1). Returned fn maps
    x: (N, D) -> (N, 1). Constant padding is done once here (hoisted out of the
    per-call path); the per-call wrapper is jitted into a single XLA program.
    """
    f32 = jnp.float32
    centers = jnp.asarray(centers, f32)
    coefs_rbf = jnp.asarray(coefs_rbf, f32).reshape(-1, 1)
    wp = jnp.asarray(coefs_poly, f32).reshape(-1)    # (1+D,)
    M, D = centers.shape
    assert coefs_rbf.shape[0] == M
    assert wp.shape[0] == 1 + D, "only a degree-1 polynomial tail is supported"

    # Pad the centers axis to a multiple of the chunk size; padded centers get
    # zero coefficients (no contribution).
    M_pad = _round_up(M, _MC)
    centers_p = jnp.zeros((M_pad, D), f32).at[:M].set(centers)
    wr_p = jnp.zeros((M_pad, 1), f32).at[:M].set(coefs_rbf)
    # TODO(synk): for very large M on v7x (64 MiB VMEM, lane-padded (M_pad, D)
    # resident buffers), tile M via a second "arbitrary" grid axis instead of
    # keeping centers fully resident.

    @jax.jit
    def forward(x):
        N, d = x.shape
        assert d == D
        tn = _choose_tn(N, max_tn=max_tn)
        N_pad = _round_up(N, tn)
        # Present points transposed as (D, N_pad): the per-step output row is
        # then fully lane-dense (unmasked stores).
        x_t = jnp.zeros((D, N_pad), f32).at[:, :N].set(x.astype(f32).T)

        out = pl.pallas_call(
            _rbf_poly_kernel,
            out_shape=jax.ShapeDtypeStruct((1, N_pad), f32),
            grid_spec=pltpu.PrefetchScalarGridSpec(
                num_scalar_prefetch=0,
                grid=(N_pad // tn,),
                in_specs=[
                    pl.BlockSpec((D, tn), lambda i: (0, i)),            # x tile (transposed)
                    pl.BlockSpec((M_pad, D), lambda i: (0, 0)),         # centers (resident)
                    pl.BlockSpec((M_pad, 1), lambda i: (0, 0)),         # rbf coefs (resident)
                    pl.BlockSpec(memory_space=pltpu.MemorySpace.SMEM),  # poly coefs (scalars)
                ],
                out_specs=pl.BlockSpec((1, tn), lambda i: (0, i)),      # lane-dense output
            ),
            compiler_params=pltpu.CompilerParams(
                dimension_semantics=("parallel",),  # >=2 steps -> both v7x TCs get work
            ),
        )(x_t, centers_p, wr_p, wp)

        return out[0, :N].reshape(N, 1)

    return forward


def reference_forward(x, centers, coefs_rbf, coefs_poly):
    diff = x[:, None, :] - centers[None, :, :]
    r = jnp.sqrt(jnp.sum(diff * diff, axis=-1))
    phi = r ** 3
    rbf_out = phi @ coefs_rbf
    poly_out = coefs_poly[0:1, :] + x @ coefs_poly[1:, :]
    return rbf_out + poly_out


if __name__ == "__main__":
    # Small, deterministic setup consistent with RBF_Poly(centers, degree=1, dim=2).
    # N=512 -> tn=256 -> 2 parallel grid steps; M=200 exercises the centers-axis
    # padding (to 224, a multiple of the 32-row chunk).
    N, D, M = 512, 2, 200
    key = jax.random.PRNGKey(0)
    kx, kc, kr, kp = jax.random.split(key, 4)

    x = jax.random.uniform(kx, (N, D), dtype=jnp.float32)            # eval points
    centers = jax.random.uniform(kc, (M, D), dtype=jnp.float32)      # fixed centers
    coefs_rbf = jax.random.normal(kr, (M, 1), dtype=jnp.float32) * 0.1
    coefs_poly = jax.random.normal(kp, (1 + D, 1), dtype=jnp.float32) * 0.1

    forward = make_rbf_poly_forward(centers, coefs_rbf, coefs_poly)
    out = jax.block_until_ready(forward(x))

    ref = reference_forward(x, centers, coefs_rbf, coefs_poly)
    assert out.shape == (N, 1)
    max_err = float(jnp.max(jnp.abs(out - ref)))
    assert jnp.allclose(out, ref, atol=1e-3, rtol=1e-3), max_err

    print("KERNEL_OK")
</pallas_src>

<mosaic_0001>
module attributes {stable_mosaic.version = 11 : i64} {
  func.func @_rbf_poly_kernel(%arg0: i32, %arg1: memref<2x256xf32, #tpu.memory_space<vmem>>, %arg2: memref<224x2xf32, #tpu.memory_space<vmem>>, %arg3: memref<224x1xf32, #tpu.memory_space<vmem>>, %arg4: memref<3xf32, #tpu.memory_space<smem>>, %arg5: memref<1x256xf32, #tpu.memory_space<vmem>>) attributes {dimension_semantics = [#tpu.dimension_semantics<parallel>], iteration_bounds = array<i64: 2>, scalar_prefetch = 0 : i64, scratch_operands = 0 : i64, tpu.core_type = #tpu.core_type<tc>, window_params = [{transform_indices = @transform_0, window_bounds = array<i64: 2, 256>}, {pipeline_mode = #tpu.pipeline_mode<synchronous>, transform_indices = @transform_1, window_bounds = array<i64: 224, 2>}, {pipeline_mode = #tpu.pipeline_mode<synchronous>, transform_indices = @transform_2, window_bounds = array<i64: 224, 1>}, {transform_indices = @transform_3, window_bounds = array<i64: 3>}, {transform_indices = @transform_4, window_bounds = array<i64: 1, 256>}]} {
    %c0 = arith.constant 0 : index
    %c0_0 = arith.constant 0 : index
    %0 = vector.load %arg1[%c0, %c0_0] : memref<2x256xf32, #tpu.memory_space<vmem>>, vector<2x256xf32>
    %c0_1 = arith.constant 0 : index
    %1 = memref.load %arg4[%c0_1] : memref<3xf32, #tpu.memory_space<smem>>
    %c1 = arith.constant 1 : index
    %2 = memref.load %arg4[%c1] : memref<3xf32, #tpu.memory_space<smem>>
    %3 = vector.extract_strided_slice %0 {offsets = [0, 0], sizes = [1, 256], strides = [1, 1]} : vector<2x256xf32> to vector<1x256xf32>
    %4 = vector.broadcast %2 : f32 to vector<1x256xf32>
    %5 = arith.mulf %4, %3 : vector<1x256xf32>
    %6 = vector.broadcast %1 : f32 to vector<1x256xf32>
    %7 = arith.addf %6, %5 : vector<1x256xf32>
    %c2 = arith.constant 2 : index
    %8 = memref.load %arg4[%c2] : memref<3xf32, #tpu.memory_space<smem>>
    %9 = vector.extract_strided_slice %0 {offsets = [1, 0], sizes = [1, 256], strides = [1, 1]} : vector<2x256xf32> to vector<1x256xf32>
    %10 = vector.broadcast %8 : f32 to vector<1x256xf32>
    %11 = arith.mulf %10, %9 : vector<1x256xf32>
    %12 = arith.addf %7, %11 : vector<1x256xf32>
    %c0_i32 = arith.constant 0 : i32
    %c32_i32 = arith.constant 32 : i32
    %13 = arith.muli %c0_i32, %c32_i32 : i32
    %14 = tpu.assume_multiple %13, 32 : i32
    %15 = arith.index_cast %14 : i32 to index
    %c0_2 = arith.constant 0 : index
    %16 = vector.load %arg2[%15, %c0_2] : memref<224x2xf32, #tpu.memory_space<vmem>>, vector<32x2xf32>
    %17 = arith.index_cast %14 : i32 to index
    %c0_3 = arith.constant 0 : index
    %18 = vector.load %arg3[%17, %c0_3] : memref<224x1xf32, #tpu.memory_space<vmem>>, vector<32x1xf32>
    %19 = vector.extract_strided_slice %16 {offsets = [0, 0], sizes = [32, 1], strides = [1, 1]} : vector<32x2xf32> to vector<32x1xf32>
    %20 = vector.extract_strided_slice %0 {offsets = [0, 0], sizes = [1, 256], strides = [1, 1]} : vector<2x256xf32> to vector<1x256xf32>
    %21 = vector.broadcast %19 : vector<32x1xf32> to vector<32x256xf32>
    %22 = vector.broadcast %20 : vector<1x256xf32> to vector<32x256xf32>
    %23 = arith.subf %21, %22 : vector<32x256xf32>
    %24 = arith.mulf %23, %23 : vector<32x256xf32>
    %25 = vector.extract_strided_slice %16 {offsets = [0, 1], sizes = [32, 1], strides = [1, 1]} : vector<32x2xf32> to vector<32x1xf32>
    %26 = vector.extract_strided_slice %0 {offsets = [1, 0], sizes = [1, 256], strides = [1, 1]} : vector<2x256xf32> to vector<1x256xf32>
    %27 = vector.broadcast %25 : vector<32x1xf32> to vector<32x256xf32>
    %28 = vector.broadcast %26 : vector<1x256xf32> to vector<32x256xf32>
    %29 = arith.subf %27, %28 : vector<32x256xf32>
    %30 = arith.mulf %29, %29 : vector<32x256xf32>
    %31 = arith.addf %24, %30 : vector<32x256xf32>
    %32 = math.sqrt %31 : vector<32x256xf32>
    %33 = arith.mulf %31, %32 : vector<32x256xf32>
    %34 = vector.broadcast %18 : vector<32x1xf32> to vector<32x256xf32>
    %35 = arith.mulf %33, %34 : vector<32x256xf32>
    %cst = arith.constant dense<0.000000e+00> : vector<256xf32>
    %36 = vector.multi_reduction <add>, %35, %cst [0] : vector<32x256xf32> to vector<256xf32>
    %37 = vector.shape_cast %36 : vector<256xf32> to vector<1x256xf32>
    %38 = arith.addf %12, %37 : vector<1x256xf32>
    %c1_i32 = arith.constant 1 : i32
    %c32_i32_4 = arith.constant 32 : i32
    %39 = arith.muli %c1_i32, %c32_i32_4 : i32
    %40 = tpu.assume_multiple %39, 32 : i32
    %41 = arith.index_cast %40 : i32 to index
    %c0_5 = arith.constant 0 : index
    %42 = vector.load %arg2[%41, %c0_5] : memref<224x2xf32, #tpu.memory_space<vmem>>, vector<32x2xf32>
    %43 = arith.index_cast %40 : i32 to index
    %c0_6 = arith.constant 0 : index
    %44 = vector.load %arg3[%43, %c0_6] : memref<224x1xf32, #tpu.memory_space<vmem>>, vector<32x1xf32>
    %45 = vector.extract_strided_slice %42 {offsets = [0, 0], sizes = [32, 1], strides = [1, 1]} : vector<32x2xf32> to vector<32x1xf32>
    %46 = vector.extract_strided_slice %0 {offsets = [0, 0], sizes = [1, 256], strides = [1, 1]} : vector<2x256xf32> to vector<1x256xf32>
    %47 = vector.broadcast %45 : vector<32x1xf32> to vector<32x256xf32>
    %48 = vector.broadcast %46 : vector<1x256xf32> to vector<32x256xf32>
    %49 = arith.subf %47, %48 : vector<32x256xf32>
    %50 = arith.mulf %49, %49 : vector<32x256xf32>
    %51 = vector.extract_strided_slice %42 {offsets = [0, 1], sizes = [32, 1], strides = [1, 1]} : vector<32x2xf32> to vector<32x1xf32>
    %52 = vector.extract_strided_slice %0 {offsets = [1, 0], sizes = [1, 256], strides = [1, 1]} : vector<2x256xf32> to vector<1x256xf32>
    %53 = vector.broadcast %51 : vector<32x1xf32> to vector<32x256xf32>
    %54 = vector.broadcast %52 : vector<1x256xf32> to vector<32x256xf32>
    %55 = arith.subf %53, %54 : vector<32x256xf32>
    %56 = arith.mulf %55, %55 : vector<32x256xf32>
    %57 = arith.addf %50, %56 : vector<32x256xf32>
    %58 = math.sqrt %57 : vector<32x256xf32>
    %59 = arith.mulf %57, %58 : vector<32x256xf32>
    %60 = vector.broadcast %44 : vector<32x1xf32> to vector<32x256xf32>
    %61 = arith.mulf %59, %60 : vector<32x256xf32>
    %cst_7 = arith.constant dense<0.000000e+00> : vector<256xf32>
    %62 = vector.multi_reduction <add>, %61, %cst_7 [0] : vector<32x256xf32> to vector<256xf32>
    %63 = vector.shape_cast %62 : vector<256xf32> to vector<1x256xf32>
    %64 = arith.addf %38, %63 : vector<1x256xf32>
    %c2_i32 = arith.constant 2 : i32
    %c32_i32_8 = arith.constant 32 : i32
    %65 = arith.muli %c2_i32, %c32_i32_8 : i32
    %66 = tpu.assume_multiple %65, 32 : i32
    %67 = arith.index_cast %66 : i32 to index
    %c0_9 = arith.constant 0 : index
    %68 = vector.load %arg2[%67, %c0_9] : memref<224x2xf32, #tpu.memory_space<vmem>>, vector<32x2xf32>
    %69 = arith.index_cast %66 : i32 to index
    %c0_10 = arith.constant 0 : index
    %70 = vector.load %arg3[%69, %c0_10] : memref<224x1xf32, #tpu.memory_space<vmem>>, vector<32x1xf32>
    %71 = vector.extract_strided_slice %68 {offsets = [0, 0], sizes = [32, 1], strides = [1, 1]} : vector<32x2xf32> to vector<32x1xf32>
    %72 = vector.extract_strided_slice %0 {offsets = [0, 0], sizes = [1, 256], strides = [1, 1]} : vector<2x256xf32> to vector<1x256xf32>
    %73 = vector.broadcast %71 : vector<32x1xf32> to vector<32x256xf32>
    %74 = vector.broadcast %72 : vector<1x256xf32> to vector<32x256xf32>
    %75 = arith.subf %73, %74 : vector<32x256xf32>
    %76 = arith.mulf %75, %75 : vector<32x256xf32>
    %77 = vector.extract_strided_slice %68 {offsets = [0, 1], sizes = [32, 1], strides = [1, 1]} : vector<32x2xf32> to vector<32x1xf32>
    %78 = vector.extract_strided_slice %0 {offsets = [1, 0], sizes = [1, 256], strides = [1, 1]} : vector<2x256xf32> to vector<1x256xf32>
    %79 = vector.broadcast %77 : vector<32x1xf32> to vector<32x256xf32>
    %80 = vector.broadcast %78 : vector<1x256xf32> to vector<32x256xf32>
    %81 = arith.subf %79, %80 : vector<32x256xf32>
    %82 = arith.mulf %81, %81 : vector<32x256xf32>
    %83 = arith.addf %76, %82 : vector<32x256xf32>
    %84 = math.sqrt %83 : vector<32x256xf32>
    %85 = arith.mulf %83, %84 : vector<32x256xf32>
    %86 = vector.broadcast %70 : vector<32x1xf32> to vector<32x256xf32>
    %87 = arith.mulf %85, %86 : vector<32x256xf32>
    %cst_11 = arith.constant dense<0.000000e+00> : vector<256xf32>
    %88 = vector.multi_reduction <add>, %87, %cst_11 [0] : vector<32x256xf32> to vector<256xf32>
    %89 = vector.shape_cast %88 : vector<256xf32> to vector<1x256xf32>
    %90 = arith.addf %64, %89 : vector<1x256xf32>
    %c3_i32 = arith.constant 3 : i32
    %c32_i32_12 = arith.constant 32 : i32
    %91 = arith.muli %c3_i32, %c32_i32_12 : i32
    %92 = tpu.assume_multiple %91, 32 : i32
    %93 = arith.index_cast %92 : i32 to index
    %c0_13 = arith.constant 0 : index
    %94 = vector.load %arg2[%93, %c0_13] : memref<224x2xf32, #tpu.memory_space<vmem>>, vector<32x2xf32>
    %95 = arith.index_cast %92 : i32 to index
    %c0_14 = arith.constant 0 : index
    %96 = vector.load %arg3[%95, %c0_14] : memref<224x1xf32, #tpu.memory_space<vmem>>, vector<32x1xf32>
    %97 = vector.extract_strided_slice %94 {offsets = [0, 0], sizes = [32, 1], strides = [1, 1]} : vector<32x2xf32> to vector<32x1xf32>
    %98 = vector.extract_strided_slice %0 {offsets = [0, 0], sizes = [1, 256], strides = [1, 1]} : vector<2x256xf32> to vector<1x256xf32>
    %99 = vector.broadcast %97 : vector<32x1xf32> to vector<32x256xf32>
    %100 = vector.broadcast %98 : vector<1x256xf32> to vector<32x256xf32>
    %101 = arith.subf %99, %100 : vector<32x256xf32>
    %102 = arith.mulf %101, %101 : vector<32x256xf32>
    %103 = vector.extract_strided_slice %94 {offsets = [0, 1], sizes = [32, 1], strides = [1, 1]} : vector<32x2xf32> to vector<32x1xf32>
    %104 = vector.extract_strided_slice %0 {offsets = [1, 0], sizes = [1, 256], strides = [1, 1]} : vector<2x256xf32> to vector<1x256xf32>
    %105 = vector.broadcast %103 : vector<32x1xf32> to vector<32x256xf32>
    %106 = vector.broadcast %104 : vector<1x256xf32> to vector<32x256xf32>
    %107 = arith.subf %105, %106 : vector<32x256xf32>
    %108 = arith.mulf %107, %107 : vector<32x256xf32>
    %109 = arith.addf %102, %108 : vector<32x256xf32>
    %110 = math.sqrt %109 : vector<32x256xf32>
    %111 = arith.mulf %109, %110 : vector<32x256xf32>
    %112 = vector.broadcast %96 : vector<32x1xf32> to vector<32x256xf32>
    %113 = arith.mulf %111, %112 : vector<32x256xf32>
    %cst_15 = arith.constant dense<0.000000e+00> : vector<256xf32>
    %114 = vector.multi_reduction <add>, %113, %cst_15 [0] : vector<32x256xf32> to vector<256xf32>
    %115 = vector.shape_cast %114 : vector<256xf32> to vector<1x256xf32>
    %116 = arith.addf %90, %115 : vector<1x256xf32>
    %c4_i32 = arith.constant 4 : i32
    %c32_i32_16 = arith.constant 32 : i32
    %117 = arith.muli %c4_i32, %c32_i32_16 : i32
    %118 = tpu.assume_multiple %117, 32 : i32
    %119 = arith.index_cast %118 : i32 to index
    %c0_17 = arith.constant 0 : index
    %120 = vector.load %arg2[%119, %c0_17] : memref<224x2xf32, #tpu.memory_space<vmem>>, vector<32x2xf32>
    %121 = arith.index_cast %118 : i32 to index
    %c0_18 = arith.constant 0 : index
    %122 = vector.load %arg3[%121, %c0_18] : memref<224x1xf32, #tpu.memory_space<vmem>>, vector<32x1xf32>
    %123 = vector.extract_strided_slice %120 {offsets = [0, 0], sizes = [32, 1], strides = [1, 1]} : vector<32x2xf32> to vector<32x1xf32>
    %124 = vector.extract_strided_slice %0 {offsets = [0, 0], sizes = [1, 256], strides = [1, 1]} : vector<2x256xf32> to vector<1x256xf32>
    %125 = vector.broadcast %123 : vector<32x1xf32> to vector<32x256xf32>
    %126 = vector.broadcast %124 : vector<1x256xf32> to vector<32x256xf32>
    %127 = arith.subf %125, %126 : vector<32x256xf32>
    %128 = arith.mulf %127, %127 : vector<32x256xf32>
    %129 = vector.extract_strided_slice %120 {offsets = [0, 1], sizes = [32, 1], strides = [1, 1]} : vector<32x2xf32> to vector<32x1xf32>
    %130 = vector.extract_strided_slice %0 {offsets = [1, 0], sizes = [1, 256], strides = [1, 1]} : vector<2x256xf32> to vector<1x256xf32>
    %131 = vector.broadcast %129 : vector<32x1xf32> to vector<32x256xf32>
    %132 = vector.broadcast %130 : vector<1x256xf32> to vector<32x256xf32>
    %133 = arith.subf %131, %132 : vector<32x256xf32>
    %134 = arith.mulf %133, %133 : vector<32x256xf32>
    %135 = arith.addf %128, %134 : vector<32x256xf32>
    %136 = math.sqrt %135 : vector<32x256xf32>
    %137 = arith.mulf %135, %136 : vector<32x256xf32>
    %138 = vector.broadcast %122 : vector<32x1xf32> to vector<32x256xf32>
    %139 = arith.mulf %137, %138 : vector<32x256xf32>
    %cst_19 = arith.constant dense<0.000000e+00> : vector<256xf32>
    %140 = vector.multi_reduction <add>, %139, %cst_19 [0] : vector<32x256xf32> to vector<256xf32>
    %141 = vector.shape_cast %140 : vector<256xf32> to vector<1x256xf32>
    %142 = arith.addf %116, %141 : vector<1x256xf32>
    %c5_i32 = arith.constant 5 : i32
    %c32_i32_20 = arith.constant 32 : i32
    %143 = arith.muli %c5_i32, %c32_i32_20 : i32
    %144 = tpu.assume_multiple %143, 32 : i32
    %145 = arith.index_cast %144 : i32 to index
    %c0_21 = arith.constant 0 : index
    %146 = vector.load %arg2[%145, %c0_21] : memref<224x2xf32, #tpu.memory_space<vmem>>, vector<32x2xf32>
    %147 = arith.index_cast %144 : i32 to index
    %c0_22 = arith.constant 0 : index
    %148 = vector.load %arg3[%147, %c0_22] : memref<224x1xf32, #tpu.memory_space<vmem>>, vector<32x1xf32>
    %149 = vector.extract_strided_slice %146 {offsets = [0, 0], sizes = [32, 1], strides = [1, 1]} : vector<32x2xf32> to vector<32x1xf32>
    %150 = vector.extract_strided_slice %0 {offsets = [0, 0], sizes = [1, 256], strides = [1, 1]} : vector<2x256xf32> to vector<1x256xf32>
    %151 = vector.broadcast %149 : vector<32x1xf32> to vector<32x256xf32>
    %152 = vector.broadcast %150 : vector<1x256xf32> to vector<32x256xf32>
    %153 = arith.subf %151, %152 : vector<32x256xf32>
    %154 = arith.mulf %153, %153 : vector<32x256xf32>
    %155 = vector.extract_strided_slice %146 {offsets = [0, 1], sizes = [32, 1], strides = [1, 1]} : vector<32x2xf32> to vector<32x1xf32>
    %156 = vector.extract_strided_slice %0 {offsets = [1, 0], sizes = [1, 256], strides = [1, 1]} : vector<2x256xf32> to vector<1x256xf32>
    %157 = vector.broadcast %155 : vector<32x1xf32> to vector<32x256xf32>
    %158 = vector.broadcast %156 : vector<1x256xf32> to vector<32x256xf32>
    %159 = arith.subf %157, %158 : vector<32x256xf32>
    %160 = arith.mulf %159, %159 : vector<32x256xf32>
    %161 = arith.addf %154, %160 : vector<32x256xf32>
    %162 = math.sqrt %161 : vector<32x256xf32>
    %163 = arith.mulf %161, %162 : vector<32x256xf32>
    %164 = vector.broadcast %148 : vector<32x1xf32> to vector<32x256xf32>
    %165 = arith.mulf %163, %164 : vector<32x256xf32>
    %cst_23 = arith.constant dense<0.000000e+00> : vector<256xf32>
    %166 = vector.multi_reduction <add>, %165, %cst_23 [0] : vector<32x256xf32> to vector<256xf32>
    %167 = vector.shape_cast %166 : vector<256xf32> to vector<1x256xf32>
    %168 = arith.addf %142, %167 : vector<1x256xf32>
    %c6_i32 = arith.constant 6 : i32
    %c32_i32_24 = arith.constant 32 : i32
    %169 = arith.muli %c6_i32, %c32_i32_24 : i32
    %170 = tpu.assume_multiple %169, 32 : i32
    %171 = arith.index_cast %170 : i32 to index
    %c0_25 = arith.constant 0 : index
    %172 = vector.load %arg2[%171, %c0_25] : memref<224x2xf32, #tpu.memory_space<vmem>>, vector<32x2xf32>
    %173 = arith.index_cast %170 : i32 to index
    %c0_26 = arith.constant 0 : index
    %174 = vector.load %arg3[%173, %c0_26] : memref<224x1xf32, #tpu.memory_space<vmem>>, vector<32x1xf32>
    %175 = vector.extract_strided_slice %172 {offsets = [0, 0], sizes = [32, 1], strides = [1, 1]} : vector<32x2xf32> to vector<32x1xf32>
    %176 = vector.extract_strided_slice %0 {offsets = [0, 0], sizes = [1, 256], strides = [1, 1]} : vector<2x256xf32> to vector<1x256xf32>
    %177 = vector.broadcast %175 : vector<32x1xf32> to vector<32x256xf32>
    %178 = vector.broadcast %176 : vector<1x256xf32> to vector<32x256xf32>
    %179 = arith.subf %177, %178 : vector<32x256xf32>
    %180 = arith.mulf %179, %179 : vector<32x256xf32>
    %181 = vector.extract_strided_slice %172 {offsets = [0, 1], sizes = [32, 1], strides = [1, 1]} : vector<32x2xf32> to vector<32x1xf32>
    %182 = vector.extract_strided_slice %0 {offsets = [1, 0], sizes = [1, 256], strides = [1, 1]} : vector<2x256xf32> to vector<1x256xf32>
    %183 = vector.broadcast %181 : vector<32x1xf32> to vector<32x256xf32>
    %184 = vector.broadcast %182 : vector<1x256xf32> to vector<32x256xf32>
    %185 = arith.subf %183, %184 : vector<32x256xf32>
    %186 = arith.mulf %185, %185 : vector<32x256xf32>
    %187 = arith.addf %180, %186 : vector<32x256xf32>
    %188 = math.sqrt %187 : vector<32x256xf32>
    %189 = arith.mulf %187, %188 : vector<32x256xf32>
    %190 = vector.broadcast %174 : vector<32x1xf32> to vector<32x256xf32>
    %191 = arith.mulf %189, %190 : vector<32x256xf32>
    %cst_27 = arith.constant dense<0.000000e+00> : vector<256xf32>
    %192 = vector.multi_reduction <add>, %191, %cst_27 [0] : vector<32x256xf32> to vector<256xf32>
    %193 = vector.shape_cast %192 : vector<256xf32> to vector<1x256xf32>
    %194 = arith.addf %168, %193 : vector<1x256xf32>
    %c7_i32 = arith.constant 7 : i32
    %c0_28 = arith.constant 0 : index
    %c0_29 = arith.constant 0 : index
    %195 = vector.load %arg5[%c0_28, %c0_29] : memref<1x256xf32, #tpu.memory_space<vmem>>, vector<1x256xf32>
    tpu.vector_store %arg5[%c0_28, %c0_29], %194 {strides = array<i32>} : memref<1x256xf32, #tpu.memory_space<vmem>>, vector<1x256xf32>,
    return
  }
  func.func @transform_0(%arg0: i32) -> (i32, i32) {
    %c0_i32 = arith.constant 0 : i32
    %c0_i32_0 = arith.constant 0 : i32
    return %c0_i32, %arg0 : i32, i32
  }
  func.func @transform_1(%arg0: i32) -> (i32, i32) {
    %c0_i32 = arith.constant 0 : i32
    %c0_i32_0 = arith.constant 0 : i32
    %c0_i32_1 = arith.constant 0 : i32
    return %c0_i32, %c0_i32_0 : i32, i32
  }
  func.func @transform_2(%arg0: i32) -> (i32, i32) {
    %c0_i32 = arith.constant 0 : i32
    %c0_i32_0 = arith.constant 0 : i32
    %c0_i32_1 = arith.constant 0 : i32
    return %c0_i32, %c0_i32_0 : i32, i32
  }
  func.func @transform_3(%arg0: i32) -> i32 {
    %c0_i32 = arith.constant 0 : i32
    %c0_i32_0 = arith.constant 0 : i32
    return %c0_i32 : i32
  }
  func.func @transform_4(%arg0: i32) -> (i32, i32) {
    %c0_i32 = arith.constant 0 : i32
    %c0_i32_0 = arith.constant 0 : i32
    return %c0_i32, %arg0 : i32, i32
  }
}

</mosaic_0001>

<bundles_post_ra>
// kernel: forward.1
= control target key start
LH: loop header
LB: loop body
LE: loop exit
PB: predicated region body
PF: predicated region fallthrough
CT: control target
= control target key end

     0   :  { %9 = vsyncpa [#allocation3], 0  ;;  %s4052_s0 = inlined_call_operand.hbm [shape: f32[2,512], index: 0, kind: input, shape index: {}]   ;;  %s4053_s1 = inlined_call_operand.hbm [shape: f32[224,2], index: 1, kind: input, shape index: {}]   ;;  %s4054_s2 = inlined_call_operand.hbm [shape: f32[224,1], index: 2, kind: input, shape index: {}]   ;;  %s4055_s3 = inlined_call_operand.vmem [shape: f32[3], index: 3, kind: input, shape index: {}]   ;;  %s4056_s4 = inlined_call_operand.hbm [shape: f32[1,512], index: 4, kind: output, shape index: {}]  }
   0x1   :  { %11 = vsyncpa [#allocation3 + $0x1], 0 }
   0x2   :  { %12 = vsyncpa [#allocation7], 0 }
   0x3   :  { %13 = vsyncpa [#allocation5], 0 }
   0x4   :  { %14 = vsyncpa [#allocation4], 0 }
   0x5   :  { %16 = vsyncpa [#allocation4 + $0x1], 0  ;;  %s2580_s15 = smov 0   ;;  %s2582_s16 = smov 0  }
   0x6   :  { %s2584_s17 = smov 0   ;;  %s2586_s18 = smov 0  }
   0x7 LB: > { %s153_s21 = sshll.u32 %s4053_s1, 4  ;;  %s2604_s22 = sadd.s32 4294967295, %s2546_s18   ;;  %s2546_s18 = sphi %s2586_s18, %s4089_s18   ;;  %s2542_s17 = sphi %s2584_s17, %s4088_s17   ;;  %s2538_s16 = sphi %s2582_s16, %s4087_s16   ;;  %s2534_s15 = sphi %s2580_s15, %s4086_s15   ;;  %s154_s21 = int_to_ptr.hbm [resolvable:$true] %s153_s21 }
   0x8   : > { %p2119_p0 = scmp.ge.s32.totalorder %s2546_s18, 1  ;;  %p43_p1 = scmp.eq.s32.totalorder %s2604_s22, 0 }
   0x9   : > { %p142_p2 = scmp.lt.s32.totalorder %s2546_s18, 3  ;;  %s2548_s24 = smov [#allocation6]  }
   0xa   : > { %s155_s25 = sshll.u32 %s2548_s24, 4  ;;  %s167_s28 = sshll.u32 %s4054_s2, 4  ;;  %s156_s25 = int_to_ptr.vmem [resolvable:$true] %s155_s25  ;;  %s168_s28 = int_to_ptr.hbm [resolvable:$true] %s167_s28 }
   0xb   : > { %p2609_p3 = pnand %p2119_p0, %p142_p2  ;;  %s182_s5 = sshll.u32 %s4055_s3, 4  ;;  %s183_s5 = int_to_ptr.vmem [resolvable:$true] %s182_s5 }
   0xc   : > { %s2549_s6 = smov [#allocation8]   ;;  %s2550_s8 = smov 128  }
   0xd   : > { %p2157_p4 = pneg %p2609_p3  ;;  %s169_s7 = sshll.u32 %s2549_s6, 4  ;;  %s170_s7 = int_to_ptr.vmem [resolvable:$true] %s169_s7 }
   0xe   : > { %s2551_s9 = smov 8   ;;  %s2552_s10 = smov [#allocation9]  }
   0xf   : > { %p2158_p6 = pnand %p2157_p4, %p43_p1  ;;  %s2118_s11 = sadd.s32 4294967294, %s2546_s18  }
  0x10   : > { %s2626_s12 = sadd.s32 1, %s2546_s18   ;;  %s29_s13 = sadd.s32 1, %s2542_s17 }
  0x11   : > { %2160 = dma.hbm_to_vmem [thread:$0]  (!%p2158_p6), %s154_s21, 3584, %s156_s25, [#allocation7], %s2550_s8, %s2550_s8, %s2551_s9  }
  0x12   : > { %2163 = dma.hbm_to_vmem [thread:$0]  (!%p2158_p6), %s168_s28, 3584, %s170_s7, [#allocation7], %s2550_s8, %s2550_s8, %s2551_s9  }
  0x13   : > { %2166 = dma.vmem_to_smem (!%p2158_p6), %s183_s5, 16, %s2552_s10, [#allocation5]  }
  0x14   : > { %s26_s14 = ssub.s32 %s2546_s18, %s2626_s12  ;;  %p36_p7 = scmp.ne.s32.totalorder %s2542_s17, %s2538_s16 }
  0x15   : > { %p27_p8 = scmp.eq.s32.totalorder %s26_s14, 0  ;;  %p37_p9 = scmp.eq.s32.totalorder %s2546_s18, 0 }
  0x16   : > { %p42_p10 = scmp.ne.s32.totalorder %s2538_s16, %s2534_s15  ;;  %p129_p11 = scmp.eq.s32.totalorder %s2604_s22, 1 }
  0x17   : > { %s2638_s19 = scalar_select %p27_p8, %s2542_s17, %s29_s13  }
  0x18   : > { %p2642_p12 = por %p43_p1, %p42_p10  ;;  %p2646_p13 = por %p129_p11, %p36_p7 }
  0x19   : > { %p135_p0 = scmp.eq.s32.totalorder %s2118_s11, 1  ;;  %p38_p2 = por %p37_p9, %p36_p7 }
  0x1a   : > { %s193_s24 = sand.u32 1, %s2542_s17   ;;  %p2178_p6 = scmp.lt.s32.totalorder %s2546_s18, 2 }
  0x1b   : > { %p2651_p4 = por %p135_p0, %p42_p10  ;;  %s2124_s26 = sshll.u32 %s193_s24, 2 }
  0x1c   : > { %s2140_s27 = sshll.u32 %s2546_s18, 2  ;;  %s197_s6 = scalar_lea.vmem [#allocation2], %s2124_s26 }
  0x1d   : > { %s202_s30 = scalar_lea.hbm %s4052_s0, %s2140_s27  ;;  %s206_s7 = sshll.u32 %s197_s6, 4  ;;  %s207_s7 = int_to_ptr.vmem [resolvable:$true] %s206_s7 }
  0x1e   : > { %s204_s5 = sshll.u32 %s202_s30, 4  ;;  %p2660_p8 = pnand %p2178_p6, %p38_p2  ;;  %s205_s5 = int_to_ptr.hbm [resolvable:$true] %s204_s5 }
  0x1f   : > { %s194_s9 = scalar_lea.sflag [#allocation3], %s193_s24  ;;  %s2442_s10 = sshra.s32 %s205_s5, 4  ;;  %s2443_s10 = int_to_ptr.hbm [resolvable:$true] %s2442_s10 }
  0x20   : > { %s2444_s11 = scalar_lea.hbm %s2443_s10, 4  ;;  %p2446_p9 = pneg %p2660_p8 }
  0x21   : > { %p2445_p7 = scmp.ne.s32.totalorder %s2443_s10, %s2444_s11  ;;  %s2449_s26 = scalar_lea.hbm %s4052_s0, 8 }
  0x22   : > { %p2450_p0 = scmp.lt.s32.totalorder %s2443_s10, %s4052_s0  ;;  %p2451_p2 = scmp.lt.s32.totalorder %s2449_s26, %s2444_s11 }
  0x23   : > { %p2447_p10 = pnand %p2446_p9, %p2445_p7 }
  0x24   : > { %p2452_p6 = por %p2451_p2, %p2450_p0 }
  0x25   : > { %p2448_p11 = pneg %p2447_p10 }
  0x27   : > { %p2453_p5 = pnand %p2452_p6, %p2448_p11 }
  0x29   : > { %2456 = shalt.err (!%p2453_p5)
}
  0x2a   : > { %2170 = dma.hbm_to_vmem [thread:$0]  (!%p2660_p8), %s205_s5, 64, %s207_s7, %s194_s9  }
  0x2b   : > { %215 = sbr.rel (%p2609_p3) target bundleno = 530 (0x212), region = 36 }
  0x30   : > { %s2677_s24 = sand.u32 1, %s2538_s16  }
  0x31   : > { %s2128_s29 = sshll.u32 %s2677_s24, 2  ;;  %s218_s30 = scalar_lea.sflag [#allocation3], %s2677_s24 }
  0x32   : > { %s2681_s6 = scalar_lea.vmem [#allocation2], %s2128_s29 }
  0x33   : > { %2517 = dma.done.wait (%p2642_p12), %s218_s30, 64  }
  0x34   : > { %2519 = vsyncadd (%p2642_p12), %s218_s30, 4294967232 }
  0x35   : > { %2521 = dma.done.wait (%p43_p1), [#allocation7], 7168  }
  0x36   : > { %2523 = vsyncadd (%p43_p1), [#allocation7], 4294960128 }
  0x37   : > { %2525 = dma.done.wait (%p43_p1), [#allocation5], 16  }
  0x38   : > { %2527 = vsyncadd (%p43_p1), [#allocation5], 4294967280 }
  0x39   : > { %242 = sfence }
  0x3a   : > { %v2695_v0 = vld [vmem:[#allocation6 + $0x10] sm:$0xff]  ;;  %v280_v1 = vld [vmem:[#allocation6] sm:$0xff]  ;;  %v4057_v2 = vmov 1   ;;  %v4059_v3 = vmov 0   ;;  %v283_v4 = vld [vmem:[#allocation6 + $0x18] sm:$0xff]  ;;  %s3170_s23 = sld [smem:[#allocation9 + $0x1]] }
  0x3b   : > { %2224 = vset.pattern.permute.xlu2 %v4057_v2  ;;  %2223 = vset.pattern.permute.xlu1 %v4059_v3  ;;  %v281_v5 = vld [vmem:[#allocation6 + $0x8] sm:$0xff]  ;;  %v287_v6 = vld [vmem:[#allocation8 + $0x18] sm:$0xff]  ;;  %v284_v7 = vld [vmem:[#allocation8] sm:$0xff]  ;;  %s3191_s20 = sld [smem:[#allocation9 + $0x2]]  ;;  %s2132_s7 = sshll.u32 %s2677_s24, 1 }
  0x3c   : > { %2222 = vset.pattern.permute.xlu0 %v4059_v3  ;;  %300 = vperm.xlu1 %2223, %v2695_v0   ;;  %v541_v8 = vld [vmem:[#allocation8 + $0x28] sm:$0xff]  ;;  %v286_v9 = vld [vmem:[#allocation8 + $0x10] sm:$0xff]  ;;  %v535_v13 = vld [vmem:[#allocation6 + $0x20] sm:$0xff]  ;;  %s3221_s5 = sld [smem:[#allocation9]]  ;;  %s2137_s8 = sshll.u32 %s2604_s22, 1 }
  0x3d   : > { %332 = vperm.xlu2 %2224, %v280_v1   ;;  %290 = vperm.xlu0 %2222, %v280_v1   ;;  %v285_v10 = vld [vmem:[#allocation8 + $0x8] sm:$0xff]  ;;  %v779_v11 = vld [vmem:[#allocation6 + $0x50] sm:$0xff]  ;;  %v538_v15 = vld [vmem:[#allocation6 + $0x38] sm:$0xff]  ;;  %s2012_s11 = scalar_lea.hbm %s4056_s4, %s2137_s8  ;;  %s262_s13 = scalar_lea.vmem [#allocation10], %s2132_s7 }
  0x3e   : > { %v536_v12 = vld [vmem:[#allocation6 + $0x28] sm:$0xff]  ;;  %v784_v14 = vld [vmem:[#allocation8 + $0x50] sm:$0xff]  ;;  %v2704_v17 = vld [vmem:[#allocation6 + $0x78] sm:$0xff]  ;;  %s2014_s14 = sshll.u32 %s262_s13, 4  ;;  %s2016_s26 = sshll.u32 %s2012_s11, 4  ;;  %s2015_s14 = int_to_ptr.vmem [resolvable:$true] %s2014_s14  ;;  %s2017_s26 = int_to_ptr.hbm [resolvable:$true] %s2016_s26 }
  0x3f   : > { %v537_v16 = vld [vmem:[#allocation6 + $0x30] sm:$0xff]  ;;  %v1027_v18 = vld [vmem:[#allocation8 + $0x78] sm:$0xff]  ;;  %v540_v19 = vld [vmem:[#allocation8 + $0x20] sm:$0xff]  ;;  %s2002_s22 = scalar_lea.sflag [#allocation4], %s2677_s24  ;;  %s2486_s27 = sshra.s32 %s2017_s26, 4  ;;  %s2487_s27 = int_to_ptr.hbm [resolvable:$true] %s2486_s27 }
  0x40   : > { %v1267_v20 = vld [vmem:[#allocation8 + $0x88] sm:$0xff]  ;;  %v543_v21 = vld [vmem:[#allocation8 + $0x38] sm:$0xff]  ;;  %v542_v22 = vld [vmem:[#allocation8 + $0x30] sm:$0xff]  ;;  %s2488_s28 = scalar_lea.hbm %s2487_s27, 2  ;;  %p2493_p12 = scmp.lt.s32.totalorder %s2487_s27, %s4056_s4 }
  0x41   : > { %v2711_v23 = vld [vmem:[#allocation6 + $0xb0] sm:$0xff]  ;;  %v778_v24 = vld [vmem:[#allocation6 + $0x48] sm:$0xff]  ;;  %v777_v25 = vld [vmem:[#allocation6 + $0x40] sm:$0xff]  ;;  %p2489_p1 = scmp.ne.s32.totalorder %s2487_s27, %s2488_s28 }
  0x42   : > { %v780_v26 = vld [vmem:[#allocation6 + $0x58] sm:$0xff]  ;;  %v783_v28 = vld [vmem:[#allocation8 + $0x48] sm:$0xff]  ;;  %v782_v30 = vld [vmem:[#allocation8 + $0x40] sm:$0xff] }
  0x43   : > { %v265_v31 = vld [vmem:[%s2681_s6] sm:$0xf]  ;;  %v1021_v32 = vld [vmem:[#allocation6 + $0x70] sm:$0xff]  ;;  %v1019_v35 = vld [vmem:[#allocation6 + $0x60] sm:$0xff]  ;;  %p2490_p3 = pnand %p2489_p1, %p2646_p13 }
  0x44   : > { %305 = vperm.xlu1 %2223, %v283_v4   ;;  %v347_v33 = vperm.slane %v265_v31, 1  ;;  %v348_v34 = vperm.slane %v265_v31, 3  ;;  %v785_v39 = vld [vmem:[#allocation8 + $0x58] sm:$0xff]  ;;  %v309_v40 = vperm.slane %v265_v31, 0  ;;  %v310_v41 = vperm.slane %v265_v31, 2  ;;  %v1020_v53 = vld [vmem:[#allocation6 + $0x68] sm:$0xff] }
  0x45   : > { %336 = vperm.xlu2 %2224, %v281_v5   ;;  %295 = vperm.xlu0 %2222, %v281_v5   ;;  %v2747_v62 = vld [vmem:[#allocation6 + $0x80] sm:$0xff]  ;;  %p2491_p5 = pneg %p2490_p3 }
  0x46   : > { %v2721_v36 = vperm.slane %v347_v33, 1  ;;  %v2723_v37 = vperm.slane %v348_v34, 1  ;;  %v2729_v44 = vperm.slane %v309_v40, 0  ;;  %v2731_v45 = vperm.slane %v310_v41, 0 }
  0x4c   : > { %2225 = vset.pattern.permute.xlu1 %v4057_v2 }
  0x4d   : > { %2226 = vset.pattern.permute.xlu2 %v4059_v3  ;;  %498 = vperm.xlu0 %2222, %v287_v6  }
  0x4e   : > { %344 = vperm.xlu1 %2225, %v283_v4   ;;  %483 = vperm.xlu2 %2226, %v284_v7  }
  0x55   : > { %731 = vperm.xlu0 %2222, %v541_v8  }
  0x56   : > { %2227 = vset.pattern.permute.xlu1 %v4059_v3  ;;  %493 = vperm.xlu2 %2226, %v286_v9  }
  0x57   : > { %488 = vperm.xlu1 %2227, %v285_v10  }
  0x5d   : > { %798 = vperm.xlu0 %2222, %v779_v11  }
  0x5e   : > { %551 = vperm.xlu2 %2226, %v536_v12  }
  0x5f   : > { %546 = vperm.xlu1 %2227, %v535_v13  }
  0x65   : > { %978 = vperm.xlu0 %2222, %v784_v14  }
  0x66   : > { %561 = vperm.xlu2 %2226, %v538_v15  }
  0x67   : > { %556 = vperm.xlu1 %2227, %v537_v16  }
  0x6d   : > { %1045 = vperm.xlu0 %2222, %v2704_v17  }
  0x6e   : > { %2229 = vset.pattern.permute.xlu2 %v4057_v2 }
  0x6f   : > { %2228 = vset.pattern.permute.xlu1 %v4057_v2  ;;  %589 = vperm.xlu2 %2229, %v537_v16  }
  0x70   : > { %585 = vperm.xlu1 %2228, %v536_v12  }
  0x75   : > { %1225 = vperm.xlu0 %2222, %v1027_v18  }
  0x77   : > { %2230 = vset.pattern.permute.xlu2 %v4059_v3 }
  0x78   : > { %593 = vperm.xlu1 %2228, %v538_v15   ;;  %726 = vperm.xlu2 %2230, %v540_v19  }
  0x7d   : > { %1457 = vperm.xlu0 %2222, %v1267_v20  }
  0x80   : > { %2231 = vset.pattern.permute.xlu1 %v4059_v3  ;;  %741 = vperm.xlu2 %2230, %v543_v21  }
  0x81   : > { %736 = vperm.xlu1 %2231, %v542_v22  }
  0x85   : > { %1524 = vperm.xlu0 %2222, %v2711_v23  }
  0x88   : > { %793 = vperm.xlu2 %2230, %v778_v24  }
  0x89   : > { %788 = vperm.xlu1 %2231, %v777_v25  }
  0x8d   : > { %2244 = vset.pattern.permute.xlu0 %v4057_v2 }
  0x8e   : > { %340 = vperm.xlu0 %2244, %v2695_v0  }
  0x90   : > { %2232 = vset.pattern.permute.xlu2 %v4057_v2 }
  0x91   : > { %803 = vperm.xlu1 %2231, %v780_v26   ;;  %823 = vperm.xlu2 %2232, %v777_v25   ;;  %v1024_v25 = vld [vmem:[#allocation8 + $0x60] sm:$0xff] }
  0x96   : > { %581 = vperm.xlu0 %2244, %v535_v13  }
  0x97   : > { %v333_v27 = vpop.permute.xlu2 %332 }
  0x98   : > { %v353_v42 = vsub.f32 %v333_v27, %v2721_v36  ;;  %v354_v43 = vsub.f32 %v333_v27, %v2723_v37 }
  0x99   : > { %2233 = vset.pattern.permute.xlu1 %v4057_v2  ;;  %835 = vperm.xlu2 %2232, %v780_v26  }
  0x9a   : > { %831 = vperm.xlu1 %2233, %v779_v11   ;;  %v361_v48 = vmul.f32 %v353_v42, %v353_v42  ;;  %v362_v49 = vmul.f32 %v354_v43, %v354_v43 }
  0x9e   : > { %827 = vperm.xlu0 %2244, %v778_v24  }
  0x9f   : > { %v337_v29 = vpop.permute.xlu2 %336 }
  0xa0   : > { %v355_v58 = vsub.f32 %v337_v29, %v2721_v36  ;;  %v356_v59 = vsub.f32 %v337_v29, %v2723_v37 }
  0xa1   : > { %2235 = vset.pattern.permute.xlu2 %v4059_v3 }
  0xa2   : > { %2234 = vset.pattern.permute.xlu1 %v4059_v3  ;;  %973 = vperm.xlu2 %2235, %v783_v28   ;;  %v363_v4 = vmul.f32 %v355_v58, %v355_v58  ;;  %v364_v5 = vmul.f32 %v356_v59, %v356_v59  ;;  %v2772_v28 = vld [vmem:[#allocation6 + $0xa8] sm:$0xff] }
  0xa3   : > { %968 = vperm.xlu1 %2234, %v782_v30  }
  0xa6   : > { %1073 = vperm.xlu0 %2244, %v1021_v32  }
  0xa8   : > { %v2725_v38 = vpop.permute.xlu2 %483 }
  0xaa   : > { %1030 = vperm.xlu2 %2235, %v1019_v35  }
  0xab   : > { %983 = vperm.xlu1 %2234, %v785_v39  }
  0xae   : > { %v2733_v46 = vpop.permute.xlu1 %300  ;;  %1307 = vperm.xlu0 %2244, %v2747_v62  }
  0xaf   : > { %v291_v47 = vpop.permute.xlu0 %290 }
  0xb0   : > { %v315_v50 = vsub.f32 %v291_v47, %v2729_v44  ;;  %v316_v51 = vsub.f32 %v291_v47, %v2731_v45  ;;  %v2737_v52 = vpop.permute.xlu2 %493 }
  0xb2   : > { %v323_v54 = vmul.f32 %v315_v50, %v315_v50  ;;  %v324_v55 = vmul.f32 %v316_v51, %v316_v51  ;;  %1040 = vperm.xlu2 %2235, %v1021_v32  }
  0xb3   : > { %1035 = vperm.xlu1 %2234, %v1020_v53  }
  0xb4   : > { %v2739_v56 = vadd.f32 %v361_v48, %v323_v54  ;;  %v2741_v57 = vadd.f32 %v362_v49, %v324_v55  ;;  %v1026_v55 = vld [vmem:[#allocation8 + $0x70] sm:$0xff] }
  0xb6   : > { %v306_v60 = vpop.permute.xlu1 %305  ;;  %2254 = vrsqrt.f32 %v2739_v56  ;;  %1553 = vperm.xlu0 %2244, %v2772_v28   ;;  %vm384_vm0 = vcmp.eq.f32.partialorder %v2739_v56, inf  ;;  %vm386_vm1 = vcmp.eq.f32.partialorder %v2739_v56, 0.0  ;;  %v387_v59 = vand.u32 2147483648, %v2739_v56 }
  0xb7   : > { %v296_v61 = vpop.permute.xlu0 %295  ;;  %2256 = vrsqrt.f32 %v2741_v57  ;;  %v321_v14 = vsub.f32 %v306_v60, %v2729_v44  ;;  %v322_v15 = vsub.f32 %v306_v60, %v2731_v45  ;;  %vm396_vm2 = vcmp.eq.f32.partialorder %v2741_v57, inf }
  0xb8   : > { %v317_v63 = vsub.f32 %v296_v61, %v2729_v44  ;;  %v318_v0 = vsub.f32 %v296_v61, %v2731_v45  ;;  %v2751_v1 = vpop.permute.xlu2 %551  ;;  %vm398_vm3 = vcmp.eq.f32.partialorder %v2741_v57, 0.0  ;;  %v399_v60 = vand.u32 2147483648, %v2741_v57  ;;  %v1025_v61 = vld [vmem:[#allocation8 + $0x68] sm:$0xff] }
  0xb9   : > { %v329_v29 = vmul.f32 %v321_v14, %v321_v14  ;;  %v330_v30 = vmul.f32 %v322_v15, %v322_v15 }
  0xba   : > { %v325_v6 = vmul.f32 %v317_v63, %v317_v63  ;;  %v326_v7 = vmul.f32 %v318_v0, %v318_v0  ;;  %2237 = vset.pattern.permute.xlu2 %v4057_v2 }
  0xbb   : > { %2236 = vset.pattern.permute.xlu1 %v4057_v2  ;;  %1069 = vperm.xlu2 %2237, %v1020_v53  }
  0xbc   : > { %v2255_v8 = vpop.eup %2254  ;;  %v2756_v9 = vadd.f32 %v363_v4, %v325_v6  ;;  %v2758_v10 = vadd.f32 %v364_v5, %v326_v7  ;;  %1065 = vperm.xlu1 %2236, %v1019_v35   ;;  %v2799_v6 = vld [vmem:[#allocation6 + $0xc0] sm:$0xff] }
  0xbd   : > { %v2257_v11 = vpop.eup %2256  ;;  %v378_v12 = vmul.f32 %v2255_v8, %v2739_v56 }
  0xbe   : > { %v390_v13 = vmul.f32 %v2257_v11, %v2741_v57  ;;  %2258 = vrsqrt.f32 %v2756_v9  ;;  %1791 = vperm.xlu0 %2244, %v2799_v6   ;;  %vm408_vm4 = vcmp.eq.f32.partialorder %v2756_v9, inf  ;;  %vm410_vm5 = vcmp.eq.f32.partialorder %v2756_v9, 0.0 }
  0xbf   : > { %v2765_v16 = vpop.permute.xlu0 %498  ;;  %v379_v18 = vmul.f32 %v2255_v8, %v378_v12  ;;  %2260 = vrsqrt.f32 %v2758_v10  ;;  %vm420_vm6 = vcmp.eq.f32.partialorder %v2758_v10, inf  ;;  %vm422_vm7 = vcmp.eq.f32.partialorder %v2758_v10, 0.0 }
  0xc0   : > { %v345_v19 = vpop.permute.xlu1 %344  ;;  %v391_v20 = vmul.f32 %v2257_v11, %v390_v13  ;;  %v2770_v24 = vpop.permute.xlu2 %561 }
  0xc1   : > { %v359_v21 = vsub.f32 %v345_v19, %v2721_v36  ;;  %v360_v22 = vsub.f32 %v345_v19, %v2723_v37  ;;  %v380_v26 = vmul.f32 0.5, %v379_v18 }
  0xc2   : > { %v392_v27 = vmul.f32 0.5, %v391_v20 }
  0xc3   : > { %v367_v31 = vmul.f32 %v359_v21, %v359_v21  ;;  %v368_v32 = vmul.f32 %v360_v22, %v360_v22  ;;  %2238 = vset.pattern.permute.xlu2 %v4059_v3  ;;  %v381_v34 = vsub.f32 1.5, %v380_v26 }
  0xc4   : > { %v2259_v33 = vpop.eup %2258  ;;  %1077 = vperm.xlu1 %2236, %v2704_v17   ;;  %1210 = vperm.xlu2 %2238, %v1024_v25   ;;  %v393_v35 = vsub.f32 1.5, %v392_v27 }
  0xc5   : > { %v2261_v39 = vpop.eup %2260  ;;  %v2776_v40 = vadd.f32 %v367_v31, %v329_v29  ;;  %v2778_v41 = vadd.f32 %v368_v32, %v330_v30  ;;  %v402_v42 = vmul.f32 %v2259_v33, %v2756_v9  ;;  %v382_v43 = vmul.f32 %v2255_v8, %v381_v34  ;;  %v2819_v32 = vld [vmem:[#allocation6 + $0x88] sm:$0xff] }
  0xc6   : > { %v394_v47 = vmul.f32 %v2257_v11, %v393_v35  ;;  %v414_v48 = vmul.f32 %v2261_v39, %v2758_v10  ;;  %v411_v34 = vand.u32 2147483648, %v2756_v9  ;;  %v423_v35 = vand.u32 2147483648, %v2758_v10 }
  0xc7   : > { %2262 = vrsqrt.f32 %v2776_v40  ;;  %v2784_v49 = vpop.permute.xlu0 %731  ;;  %v383_v50 = vmul.f32 %v382_v43, %v2739_v56  ;;  %v403_v53 = vmul.f32 %v2259_v33, %v402_v42  ;;  %vm456_vm8 = vcmp.eq.f32.partialorder %v2776_v40, inf }
  0xc8   : > { %2264 = vrsqrt.f32 %v2778_v41  ;;  %v395_v51 = vmul.f32 %v394_v47, %v2741_v57  ;;  %v415_v54 = vmul.f32 %v2261_v39, %v414_v48  ;;  %v2829_v47 = vld [vmem:[#allocation6 + $0xd0] sm:$0xff]  ;;  %vm458_vm9 = vcmp.eq.f32.partialorder %v2776_v40, 0.0 }
  0xc9   : > { %v2789_v17 = vpop.permute.xlu1 %488  ;;  %v590_v58 = vpop.permute.xlu2 %589  ;;  %v385_v63 = vsel %vm384_vm0, %v2739_v56, %v383_v50  ;;  %v404_v4 = vmul.f32 0.5, %v403_v53  ;;  %1799 = vperm.xlu0 %2244, %v2829_v47   ;;  %vm468_vm10 = vcmp.eq.f32.partialorder %v2778_v41, inf  ;;  %vm470_vm11 = vcmp.eq.f32.partialorder %v2778_v41, 0.0 }
  0xca   : > { %v397_v0 = vsel %vm396_vm2, %v2741_v57, %v395_v51  ;;  %v416_v5 = vmul.f32 0.5, %v415_v54  ;;  %v388_v7 = vsel %vm386_vm1, %v387_v59, %v385_v63  ;;  %v600_v59 = vsub.f32 %v590_v58, %v2721_v36 }
  0xcb   : > { %v400_v8 = vsel %vm398_vm3, %v399_v60, %v397_v0  ;;  %v405_v12 = vsub.f32 1.5, %v404_v4  ;;  %v473_v14 = vmul.f32 %v388_v7, %v2739_v56 }
  0xcc   : > { %2239 = vset.pattern.permute.xlu1 %v4059_v3  ;;  %1220 = vperm.xlu2 %2238, %v1026_v55   ;;  %v417_v13 = vsub.f32 1.5, %v416_v5  ;;  %v474_v15 = vmul.f32 %v400_v8, %v2741_v57  ;;  %v471_v5 = vand.u32 2147483648, %v2778_v41 }
  0xcd   : > { %v2263_v11 = vpop.eup %2262  ;;  %1215 = vperm.xlu1 %2239, %v1025_v61   ;;  %v406_v21 = vmul.f32 %v2259_v33, %v405_v12  ;;  %v501_v25 = vmul.f32 %v2725_v38, %v473_v14  ;;  %v601_v61 = vsub.f32 %v590_v58, %v2723_v37 }
  0xce   : > { %v2265_v18 = vpop.eup %2264  ;;  %v450_v19 = vmul.f32 %v2263_v11, %v2776_v40  ;;  %v418_v22 = vmul.f32 %v2261_v39, %v417_v13  ;;  %v502_v56 = vmul.f32 %v2725_v38, %v474_v15  ;;  %v2853_v13 = vld [vmem:[#allocation6 + $0x98] sm:$0xff] }
  0xcf   : > { %v462_v20 = vmul.f32 %v2265_v18, %v2778_v41  ;;  %v2810_v26 = vpop.permute.xlu0 %798  ;;  %v407_v29 = vmul.f32 %v406_v21, %v2756_v9  ;;  %v609_v14 = vmul.f32 %v601_v61, %v601_v61 }
  0xd0   : > { %v451_v27 = vmul.f32 %v2263_v11, %v450_v19  ;;  %v419_v30 = vmul.f32 %v418_v22, %v2758_v10  ;;  %v1263_v19 = vld [vmem:[#allocation6 + $0x90] sm:$0xff] }
  0xd1   : > { %v463_v57 = vmul.f32 %v2265_v18, %v462_v20  ;;  %v2817_v31 = vpop.permute.xlu1 %546  ;;  %v409_v42 = vsel %vm408_vm4, %v2756_v9, %v407_v29  ;;  %2252 = vset.pattern.permute.xlu0 %v4059_v3 }
  0xd2   : > { %v452_v33 = vmul.f32 0.5, %v451_v27  ;;  %v2824_v39 = vpop.permute.xlu2 %726  ;;  %v421_v43 = vsel %vm420_vm6, %v2758_v10, %v419_v30  ;;  %v412_v50 = vsel %vm410_vm5, %v411_v34, %v409_v42 }
  0xd3   : > { %v464_v38 = vmul.f32 0.5, %v463_v57  ;;  %v424_v51 = vsel %vm422_vm7, %v423_v35, %v421_v43  ;;  %v475_v54 = vmul.f32 %v412_v50, %v2756_v9 }
  0xd4   : > { %v453_v48 = vsub.f32 1.5, %v452_v33  ;;  %1277 = vperm.xlu2 %2238, %v2819_v32   ;;  %v476_v55 = vmul.f32 %v424_v51, %v2758_v10 }
  0xd5   : > { %v465_v53 = vsub.f32 1.5, %v464_v38  ;;  %1272 = vperm.xlu1 %2239, %v2747_v62   ;;  %v503_v0 = vmul.f32 %v2789_v17, %v475_v54  ;;  %v459_v62 = vand.u32 2147483648, %v2776_v40  ;;  %v566_v38 = vsub.f32 %v2751_v1, %v2729_v44 }
  0xd6   : > { %v454_v60 = vmul.f32 %v2263_v11, %v453_v48  ;;  %v504_v9 = vmul.f32 %v2789_v17, %v476_v55  ;;  %v608_v11 = vmul.f32 %v600_v59, %v600_v59 }
  0xd7   : > { %v466_v63 = vmul.f32 %v2265_v18, %v465_v53  ;;  %v2842_v4 = vpop.permute.xlu0 %978  ;;  %v2849_v58 = vadd.f32 %v503_v0, %v501_v25  ;;  %v574_v50 = vmul.f32 %v566_v38, %v566_v38  ;;  %v570_v0 = vsub.f32 %v2770_v24, %v2729_v44 }
  0xd8   : > { %v455_v10 = vmul.f32 %v454_v60, %v2776_v40  ;;  %v2851_v8 = vadd.f32 %v504_v9, %v502_v56  ;;  %v571_v9 = vsub.f32 %v2770_v24, %v2731_v45 }
  0xd9   : > { %v467_v7 = vmul.f32 %v466_v63, %v2778_v41  ;;  %v557_v12 = vpop.permute.xlu1 %556 }
  0xda   : > { %v457_v17 = vsel %vm456_vm8, %v2776_v40, %v455_v10  ;;  %v568_v15 = vsub.f32 %v557_v12, %v2729_v44  ;;  %v569_v18 = vsub.f32 %v557_v12, %v2731_v45  ;;  %v2864_v22 = vpop.permute.xlu2 %741 }
  0xdb   : > { %v460_v20 = vsel %vm458_vm9, %v459_v62, %v457_v17  ;;  %v469_v21 = vsel %vm468_vm10, %v2778_v41, %v467_v7  ;;  %v1266_v7 = vld [vmem:[#allocation8 + $0x80] sm:$0xff]  ;;  %v578_v17 = vmul.f32 %v570_v0, %v570_v0 }
  0xdc   : > { %v472_v25 = vsel %vm470_vm11, %v471_v5, %v469_v21  ;;  %v479_v27 = vmul.f32 %v460_v20, %v2776_v40  ;;  %v576_v56 = vmul.f32 %v568_v15, %v568_v15  ;;  %v577_v57 = vmul.f32 %v569_v18, %v569_v18  ;;  %1287 = vperm.xlu2 %2238, %v2853_v13  }
  0xdd   : > { %v480_v29 = vmul.f32 %v472_v25, %v2778_v41  ;;  %1282 = vperm.xlu1 %2239, %v1263_v19   ;;  %v567_v41 = vsub.f32 %v2751_v1, %v2731_v45  ;;  %v319_v20 = vsub.f32 %v2733_v46, %v2729_v44  ;;  %v320_v21 = vsub.f32 %v2733_v46, %v2731_v45 }
  0xde   : > { %v2871_v30 = vmul.f32 %v2765_v16, %v479_v27  ;;  %v2873_v33 = vadd.f32 %v608_v11, %v576_v56  ;;  %v2875_v34 = vadd.f32 %v609_v14, %v577_v57  ;;  %v579_v14 = vmul.f32 %v571_v9, %v571_v9  ;;  %v1269_v9 = vld [vmem:[#allocation8 + $0x98] sm:$0xff] }
  0xdf   : > { %v2878_v35 = vmul.f32 %v2765_v16, %v480_v29  ;;  %v2880_v40 = vpop.permute.xlu0 %1045  ;;  %v575_v16 = vmul.f32 %v567_v41, %v567_v41 }
  0xe0   : > { %2266 = vrsqrt.f32 %v2873_v33  ;;  %vm675_vm12 = vcmp.eq.f32.partialorder %v2873_v33, inf  ;;  %vm687_vm13 = vcmp.eq.f32.partialorder %v2875_v34, inf  ;;  %vm677_vm14 = vcmp.eq.f32.partialorder %v2873_v33, 0.0 }
  0xe1   : > { %2268 = vrsqrt.f32 %v2875_v34  ;;  %vm689_vm15 = vcmp.eq.f32.partialorder %v2875_v34, 0.0 }
  0xe2   : > { %v586_v42 = vpop.permute.xlu1 %585  ;;  %v2892_v54 = vpop.permute.xlu2 %793 }
  0xe3   : > { %v598_v43 = vsub.f32 %v586_v42, %v2721_v36  ;;  %v599_v48 = vsub.f32 %v586_v42, %v2723_v37 }
  0xe4   : > { %2241 = vset.pattern.permute.xlu2 %v4057_v2 }
  0xe5   : > { %v606_v51 = vmul.f32 %v598_v43, %v598_v43  ;;  %v607_v53 = vmul.f32 %v599_v48, %v599_v48  ;;  %2240 = vset.pattern.permute.xlu1 %v4057_v2  ;;  %1315 = vperm.xlu2 %2241, %v1263_v19   ;;  %v2934_v48 = vmul.f32 %v320_v21, %v320_v21 }
  0xe6   : > { %v2267_v55 = vpop.eup %2266  ;;  %1311 = vperm.xlu1 %2240, %v2819_v32  }
  0xe7   : > { %v2269_v1 = vpop.eup %2268  ;;  %v2895_v59 = vadd.f32 %v606_v51, %v574_v50  ;;  %v2897_v60 = vadd.f32 %v607_v53, %v575_v16  ;;  %v2899_v61 = vpop.permute.xlu0 %1225  ;;  %v669_v63 = vmul.f32 %v2267_v55, %v2873_v33  ;;  %v810_v16 = vsub.f32 %v2810_v26, %v2729_v44 }
  0xe8   : > { %4069 = vst [vmem:[#allocation15_spill] sm:$0xff] %v2899_v61  ;;  %v681_v10 = vmul.f32 %v2269_v1, %v2875_v34 }
  0xe9   : > { %2270 = vrsqrt.f32 %v2895_v59  ;;  %v670_v11 = vmul.f32 %v2267_v55, %v669_v63  ;;  %vm651_vm0 = vcmp.eq.f32.partialorder %v2895_v59, inf  ;;  %vm663_vm1 = vcmp.eq.f32.partialorder %v2897_v60, inf }
  0xea   : > { %2272 = vrsqrt.f32 %v2897_v60  ;;  %v594_v32 = vpop.permute.xlu1 %593  ;;  %v682_v12 = vmul.f32 %v2269_v1, %v681_v10  ;;  %v811_v10 = vsub.f32 %v2810_v26, %v2731_v45  ;;  %v678_v26 = vand.u32 2147483648, %v2873_v33 }
  0xeb   : > { %v602_v62 = vsub.f32 %v594_v32, %v2721_v36  ;;  %v603_v5 = vsub.f32 %v594_v32, %v2723_v37  ;;  %v671_v24 = vmul.f32 0.5, %v670_v11  ;;  %v824_v57 = vpop.permute.xlu2 %823  ;;  %v564_v32 = vsub.f32 %v2817_v31, %v2729_v44 }
  0xec   : > { %v683_v19 = vmul.f32 0.5, %v682_v12  ;;  %v1054_v11 = vsub.f32 %v2880_v40, %v2729_v44  ;;  %vm653_vm2 = vcmp.eq.f32.partialorder %v2895_v59, 0.0  ;;  %vm665_vm3 = vcmp.eq.f32.partialorder %v2897_v60, 0.0 }
  0xed   : > { %v610_v15 = vmul.f32 %v602_v62, %v602_v62  ;;  %v611_v18 = vmul.f32 %v603_v5, %v603_v5  ;;  %2242 = vset.pattern.permute.xlu2 %v4059_v3  ;;  %v672_v38 = vsub.f32 1.5, %v671_v24  ;;  %v565_v62 = vsub.f32 %v2817_v31, %v2731_v45 }
  0xee   : > { %1319 = vperm.xlu1 %2240, %v2853_v13   ;;  %1452 = vperm.xlu2 %2242, %v1266_v7   ;;  %v684_v41 = vsub.f32 1.5, %v683_v19  ;;  %v2932_v13 = vmul.f32 %v319_v20, %v319_v20  ;;  %v1268_v7 = vld [vmem:[#allocation8 + $0x90] sm:$0xff]  ;;  %v838_v20 = vsub.f32 %v824_v57, %v2721_v36 }
  0xef   : > { %v2917_v25 = vpop.eup %2270  ;;  %v2919_v27 = vadd.f32 %v610_v15, %v578_v17  ;;  %v2921_v56 = vadd.f32 %v611_v18, %v579_v14  ;;  %v2923_v29 = vpop.permute.xlu0 %1457  ;;  %v673_v63 = vmul.f32 %v2267_v55, %v672_v38  ;;  %v690_v17 = vand.u32 2147483648, %v2875_v34 }
  0xf0   : > { %4070 = vst [vmem:[#allocation16_spill] sm:$0xff] %v2923_v29  ;;  %v2925_v42 = vpop.eup %2272  ;;  %v645_v43 = vmul.f32 %v2917_v25, %v2895_v59  ;;  %v685_v0 = vmul.f32 %v2269_v1, %v684_v41 }
  0xf1   : > { %v657_v46 = vmul.f32 %v2925_v42, %v2897_v60  ;;  %2274 = vrsqrt.f32 %v2919_v27  ;;  %v674_v12 = vmul.f32 %v673_v63, %v2873_v33  ;;  %v2973_v63 = vmul.f32 %v810_v16, %v810_v16 }
  0xf2   : > { %v646_v50 = vmul.f32 %v2917_v25, %v645_v43  ;;  %2276 = vrsqrt.f32 %v2921_v56  ;;  %v686_v55 = vmul.f32 %v685_v0, %v2875_v34  ;;  %v1055_v0 = vsub.f32 %v2880_v40, %v2731_v45 }
  0xf3   : > { %v658_v51 = vmul.f32 %v2925_v42, %v657_v46  ;;  %v737_v53 = vpop.permute.xlu1 %736  ;;  %v676_v14 = vsel %vm675_vm12, %v2873_v33, %v674_v12  ;;  %v2987_v16 = vmul.f32 %v564_v32, %v564_v32  ;;  %vm699_vm4 = vcmp.eq.f32.partialorder %v2919_v27, inf }
  0xf4   : > { %v647_v5 = vmul.f32 0.5, %v646_v50  ;;  %v688_v15 = vsel %vm687_vm13, %v2875_v34, %v686_v55  ;;  %v679_v21 = vsel %vm677_vm14, %v678_v26, %v676_v14  ;;  %vm711_vm5 = vcmp.eq.f32.partialorder %v2921_v56, inf }
  0xf5   : > { %v659_v1 = vmul.f32 0.5, %v658_v51  ;;  %v691_v38 = vsel %vm689_vm15, %v690_v17, %v688_v15  ;;  %v720_v46 = vmul.f32 %v679_v21, %v2873_v33  ;;  %v836_v51 = vpop.permute.xlu2 %835  ;;  %v2989_v17 = vmul.f32 %v565_v62, %v565_v62 }
  0xf6   : > { %2243 = vset.pattern.permute.xlu1 %v4059_v3  ;;  %1467 = vperm.xlu2 %2242, %v1269_v9   ;;  %v648_v19 = vsub.f32 1.5, %v647_v5  ;;  %v721_v50 = vmul.f32 %v691_v38, %v2875_v34  ;;  %v839_v5 = vsub.f32 %v824_v57, %v2723_v37  ;;  %v2985_v34 = vmul.f32 %v811_v10, %v811_v10 }
  0xf7   : > { %v2956_v31 = vpop.eup %2274  ;;  %1462 = vperm.xlu1 %2243, %v1268_v7   ;;  %v2962_v18 = vpop.permute.xlu0 %1524  ;;  %v660_v9 = vsub.f32 1.5, %v659_v1  ;;  %v808_v7 = vsub.f32 %v2892_v54, %v2729_v44  ;;  %v2981_v55 = vmul.f32 %v737_v53, %v720_v46  ;;  %v1503_v1 = vld [vmem:[#allocation6 + $0xa0] sm:$0xff]  ;;  %v2992_v57 = vmul.f32 %v1054_v11, %v1054_v11 }
  0xf8   : > { %4071 = vst [vmem:[#allocation17_spill] sm:$0xff] %v2962_v18  ;;  %v2964_v24 = vpop.eup %2276  ;;  %v693_v41 = vmul.f32 %v2956_v31, %v2919_v27  ;;  %v2983_v26 = vmul.f32 %v737_v53, %v721_v50  ;;  %v649_v40 = vmul.f32 %v2917_v25, %v648_v19  ;;  %v846_v15 = vmul.f32 %v838_v20, %v838_v20 }
  0xf9   : > { %v705_v43 = vmul.f32 %v2964_v24, %v2921_v56  ;;  %v661_v53 = vmul.f32 %v2925_v42, %v660_v9  ;;  %v809_v10 = vsub.f32 %v2892_v54, %v2731_v45  ;;  %v847_v38 = vmul.f32 %v839_v5, %v839_v5 }
  0xfa   : > { %v694_v14 = vmul.f32 %v2956_v31, %v693_v41  ;;  %v3001_v62 = vmul.f32 %v1055_v0, %v1055_v0  ;;  %v3003_v25 = vmul.f32 %v808_v7, %v808_v7  ;;  %v650_v20 = vmul.f32 %v649_v40, %v2895_v59 }
  0xfb   : > { %v706_v12 = vmul.f32 %v2964_v24, %v705_v43  ;;  %v789_v33 = vpop.permute.xlu1 %788  ;;  %v844_v41 = vsub.f32 %v836_v51, %v2721_v36  ;;  %v845_v42 = vsub.f32 %v836_v51, %v2723_v37  ;;  %v662_v9 = vmul.f32 %v661_v53, %v2897_v60 }
  0xfc   : > { %v806_v21 = vsub.f32 %v789_v33, %v2729_v44  ;;  %v807_v32 = vsub.f32 %v789_v33, %v2731_v45  ;;  %4072 = vst [vmem:[#allocation18_spill] sm:$0xff] %v3001_v62  ;;  %v695_v46 = vmul.f32 0.5, %v694_v14  ;;  %v3014_v5 = vmul.f32 %v809_v10, %v809_v10 }
  0xfd   : > { %v707_v11 = vmul.f32 0.5, %v706_v12  ;;  %v3018_v33 = vpop.permute.xlu2 %973  ;;  %v652_v53 = vsel %vm651_vm0, %v2895_v59, %v650_v20  ;;  %vm701_vm6 = vcmp.eq.f32.partialorder %v2919_v27, 0.0  ;;  %vm713_vm11 = vcmp.eq.f32.partialorder %v2921_v56, 0.0 }
  0xfe   : > { %1519 = vperm.xlu2 %2242, %v2772_v28   ;;  %v814_v19 = vmul.f32 %v806_v21, %v806_v21  ;;  %v815_v43 = vmul.f32 %v807_v32, %v807_v32  ;;  %v853_v21 = vmul.f32 %v845_v42, %v845_v42  ;;  %v696_v10 = vsub.f32 1.5, %v695_v46 }
  0xff   : > { %1514 = vperm.xlu1 %2243, %v1503_v1   ;;  %v708_v12 = vsub.f32 1.5, %v707_v11 }
 0x100   : > { %v341_v54 = vpop.permute.xlu0 %340  ;;  %v3008_v50 = vadd.f32 %v846_v15, %v814_v19  ;;  %v3016_v7 = vadd.f32 %v847_v38, %v815_v43  ;;  %v852_v15 = vmul.f32 %v844_v41, %v844_v41  ;;  %v654_v43 = vand.u32 2147483648, %v2895_v59 }
 0x101   : > { %v357_v28 = vsub.f32 %v341_v54, %v2721_v36  ;;  %v358_v0 = vsub.f32 %v341_v54, %v2723_v37  ;;  %v1506_v54 = vld [vmem:[#allocation6 + $0xb8] sm:$0xff]  ;;  %v709_v20 = vmul.f32 %v2964_v24, %v708_v12 }
 0x102   : > { %2278 = vrsqrt.f32 %v3008_v50  ;;  %vm869_vm7 = vcmp.eq.f32.partialorder %v3008_v50, inf  ;;  %vm871_vm9 = vcmp.eq.f32.partialorder %v3008_v50, 0.0  ;;  %vm881_vm14 = vcmp.eq.f32.partialorder %v3016_v7, inf }
 0x103   : > { %v365_v51 = vmul.f32 %v357_v28, %v357_v28  ;;  %v366_v40 = vmul.f32 %v358_v0, %v358_v0  ;;  %v804_v14 = vpop.permute.xlu1 %803  ;;  %v664_v28 = vsel %vm663_vm1, %v2897_v60, %v662_v9  ;;  %vm883_vm1 = vcmp.eq.f32.partialorder %v3016_v7, 0.0 }
 0x104   : > { %v812_v32 = vsub.f32 %v804_v14, %v2729_v44  ;;  %v813_v19 = vsub.f32 %v804_v14, %v2731_v45 }
 0x105   : > { %v3025_v38 = vadd.f32 %v365_v51, %v2932_v13  ;;  %v3028_v11 = vadd.f32 %v366_v40, %v2934_v48  ;;  %v655_v13 = vsel %vm653_vm2, %v654_v43, %v652_v53  ;;  %v666_v48 = vand.u32 2147483648, %v2897_v60 }
 0x106   : > { %v820_v41 = vmul.f32 %v812_v32, %v812_v32  ;;  %v821_v42 = vmul.f32 %v813_v19, %v813_v19  ;;  %2245 = vset.pattern.permute.xlu2 %v4057_v2  ;;  %v697_v51 = vmul.f32 %v2956_v31, %v696_v10  ;;  %v1508_v19 = vld [vmem:[#allocation8 + $0xa0] sm:$0xff]  ;;  %v3054_v53 = vmul.f32 %v655_v13, %v2895_v59  ;;  %v1031_v13 = vpop.permute.xlu2 %1030 }
 0x107   : > { %2280 = vrsqrt.f32 %v3025_v38  ;;  %1529 = vperm.xlu1 %2243, %v1506_v54   ;;  %1549 = vperm.xlu2 %2245, %v1503_v1   ;;  %v667_v12 = vsel %vm665_vm3, %v666_v48, %v664_v28  ;;  %v710_v31 = vmul.f32 %v709_v20, %v2921_v56  ;;  %vm432_vm8 = vcmp.eq.f32.partialorder %v3025_v38, inf }
 0x108   : > { %2282 = vrsqrt.f32 %v3028_v11  ;;  %v582_v46 = vpop.permute.xlu0 %581  ;;  %v3040_v0 = vpop.eup %2278  ;;  %v3044_v40 = vadd.f32 %v852_v15, %v820_v41  ;;  %v3046_v24 = vadd.f32 %v853_v21, %v821_v42  ;;  %1694 = vperm.xlu0 %2252, %v1508_v19   ;;  %v3062_v28 = vmul.f32 %v667_v12, %v2897_v60 }
 0x109   : > { %v596_v1 = vsub.f32 %v582_v46, %v2721_v36  ;;  %v597_v14 = vsub.f32 %v582_v46, %v2723_v37  ;;  %v863_v32 = vmul.f32 %v3040_v0, %v3008_v50  ;;  %2284 = vrsqrt.f32 %v3016_v7 }
 0x10a   : > { %v698_v59 = vmul.f32 %v697_v51, %v2919_v27  ;;  %vm444_vm10 = vcmp.eq.f32.partialorder %v3028_v11, inf  ;;  %vm434_vm12 = vcmp.eq.f32.partialorder %v3025_v38, 0.0  ;;  %vm446_vm13 = vcmp.eq.f32.partialorder %v3028_v11, 0.0 }
 0x10b   : > { %v604_v21 = vmul.f32 %v596_v1, %v596_v1  ;;  %v605_v10 = vmul.f32 %v597_v14, %v597_v14  ;;  %v864_v41 = vmul.f32 %v3040_v0, %v863_v32  ;;  %v1048_v14 = vsub.f32 %v1031_v13, %v2729_v44 }
 0x10c   : > { %v832_v43 = vpop.permute.xlu1 %831 }
 0x10d   : > { %v2281_v42 = vpop.eup %2280  ;;  %v842_v20 = vsub.f32 %v832_v43, %v2721_v36  ;;  %v843_v48 = vsub.f32 %v832_v43, %v2723_v37  ;;  %v3070_v32 = vadd.f32 %v604_v21, %v2987_v16  ;;  %v3073_v19 = vadd.f32 %v605_v10, %v2989_v17 }
 0x10e   : > { %v2283_v46 = vpop.eup %2282  ;;  %v426_v1 = vmul.f32 %v2281_v42, %v3025_v38  ;;  %v3081_v43 = vsel %vm711_vm5, %v2921_v56, %v710_v31  ;;  %v865_v16 = vmul.f32 0.5, %v864_v41  ;;  %v1049_v21 = vsub.f32 %v1031_v13, %v2731_v45  ;;  %v1041_v3 = vpop.permute.xlu2 %1040 }
 0x10f   : > { %v438_v60 = vmul.f32 %v2283_v46, %v3028_v11  ;;  %v850_v12 = vmul.f32 %v842_v20, %v842_v20  ;;  %v851_v51 = vmul.f32 %v843_v48, %v843_v48  ;;  %2246 = vset.pattern.permute.xlu1 %v4057_v2  ;;  %1561 = vperm.xlu2 %2245, %v1506_v54   ;;  %2286 = vrsqrt.f32 %v3070_v32  ;;  %v3088_v20 = vpop.eup %2284 }
 0x110   : > { %v427_v15 = vmul.f32 %v2281_v42, %v426_v1  ;;  %1557 = vperm.xlu1 %2246, %v2711_v23   ;;  %2288 = vrsqrt.f32 %v3073_v19  ;;  %v828_v10 = vpop.permute.xlu0 %827  ;;  %v3096_v41 = vmul.f32 %v1048_v14, %v1048_v14  ;;  %v3109_v14 = vmul.f32 %v1049_v21, %v1049_v21 }
 0x111   : > { %v439_v17 = vmul.f32 %v2283_v46, %v438_v60  ;;  %v3093_v2 = vadd.f32 %v850_v12, %v2973_v63  ;;  %v3099_v13 = vadd.f32 %v851_v51, %v2985_v34  ;;  %v700_v60 = vsel %vm699_vm4, %v2919_v27, %v698_v59 }
 0x112   : > { %v428_v48 = vmul.f32 0.5, %v427_v15  ;;  %v840_v1 = vsub.f32 %v828_v10, %v2721_v36  ;;  %v841_v63 = vsub.f32 %v828_v10, %v2723_v37  ;;  %v866_v12 = vsub.f32 1.5, %v865_v16  ;;  %v3115_v10 = vld [vmem:[#allocation6 + $0xc8] sm:$0xff] }
 0x113   : > { %v440_v23 = vmul.f32 0.5, %v439_v17  ;;  %v875_v34 = vmul.f32 %v3088_v20, %v3016_v7  ;;  %v4073_v59 = vmov 0   ;;  %vm627_vm15 = vcmp.eq.f32.partialorder %v3070_v32, inf }
 0x114   : > { %v429_v15 = vsub.f32 1.5, %v428_v48  ;;  %v848_v31 = vmul.f32 %v840_v1, %v840_v1  ;;  %v849_v54 = vmul.f32 %v841_v63, %v841_v63  ;;  %v867_v9 = vmul.f32 %v3040_v0, %v866_v12 }
 0x115   : > { %v441_v17 = vsub.f32 1.5, %v440_v23  ;;  %v2287_v51 = vpop.eup %2286  ;;  %v876_v29 = vmul.f32 %v3088_v20, %v875_v34  ;;  %vm629_vm0 = vcmp.eq.f32.partialorder %v3070_v32, 0.0  ;;  %vm639_vm2 = vcmp.eq.f32.partialorder %v3073_v19, inf }
 0x116   : > { %v430_v48 = vmul.f32 %v2281_v42, %v429_v15  ;;  %v2289_v16 = vpop.eup %2288  ;;  %v621_v23 = vmul.f32 %v2287_v51, %v3070_v32  ;;  %v4074_v42 = vand.u32 2147483648, %v2919_v27  ;;  %v1052_v15 = vsub.f32 %v1041_v3, %v2729_v44 }
 0x117   : > { %v442_v21 = vmul.f32 %v2283_v46, %v441_v17  ;;  %2248 = vset.pattern.permute.xlu2 %v4073_v59  ;;  %v633_v1 = vmul.f32 %v2289_v16, %v3073_v19  ;;  %v1053_v46 = vsub.f32 %v1041_v3, %v2731_v45  ;;  %v3131_v63 = vadd.f32 %v848_v31, %v3003_v25 }
 0x118   : > { %v703_v0 = vsel %vm701_vm6, %v4074_v42, %v700_v60  ;;  %2247 = vset.pattern.permute.xlu1 %v4073_v59  ;;  %v431_v12 = vmul.f32 %v430_v48, %v3025_v38  ;;  %v622_v17 = vmul.f32 %v2287_v51, %v621_v23  ;;  %v868_v34 = vmul.f32 %v867_v9, %v3008_v50 }
 0x119   : > { %v877_v18 = vmul.f32 0.5, %v876_v29  ;;  %1761 = vperm.xlu2 %2248, %v3115_v10   ;;  %1756 = vperm.xlu1 %2247, %v2799_v6   ;;  %v443_v60 = vmul.f32 %v442_v21, %v3028_v11  ;;  %v634_v42 = vmul.f32 %v2289_v16, %v633_v1  ;;  %v3140_v3 = vadd.f32 %v849_v54, %v3014_v5 }
 0x11a   : > { %2290 = vrsqrt.f32 %v3131_v63  ;;  %v623_v25 = vmul.f32 0.5, %v622_v17  ;;  %v870_v29 = vsel %vm869_vm7, %v3008_v50, %v868_v34  ;;  %v630_v6 = vand.u32 2147483648, %v3070_v32 }
 0x11b   : > { %v635_v9 = vmul.f32 0.5, %v634_v42  ;;  %vm641_vm3 = vcmp.eq.f32.partialorder %v3073_v19, 0.0  ;;  %v433_v5 = vsel %vm432_vm8, %v3025_v38, %v431_v12  ;;  %v4075_v31 = vand.u32 2147483648, %v3008_v50 }
 0x11c   : > { %v624_v54 = vsub.f32 1.5, %v623_v25  ;;  %v878_v21 = vsub.f32 1.5, %v877_v18  ;;  %v445_v23 = vsel %vm444_vm10, %v3028_v11, %v443_v60  ;;  %v642_v17 = vand.u32 2147483648, %v3073_v19 }
 0x11d   : > { %v873_v48 = vsel %vm871_vm9, %v4075_v31, %v870_v29  ;;  %v636_v1 = vsub.f32 1.5, %v635_v9  ;;  %2292 = vrsqrt.f32 %v3140_v3  ;;  %v3165_v42 = vmul.f32 %v1052_v15, %v1052_v15 }
 0x11e   : > { %v625_v34 = vmul.f32 %v2287_v51, %v624_v54  ;;  %v3167_v12 = vmul.f32 %v1053_v46, %v1053_v46  ;;  %v879_v25 = vmul.f32 %v3088_v20, %v878_v21  ;;  %v4076_v18 = vand.u32 2147483648, %v3025_v38  ;;  %v969_v21 = vpop.permute.xlu1 %968 }
 0x11f   : > { %v637_v9 = vmul.f32 %v2289_v16, %v636_v1  ;;  %v958_v31 = vmul.f32 %v873_v48, %v3008_v50  ;;  %v4077_v51 = vand.u32 2147483648, %v2921_v56  ;;  %v4078_v20 = vand.u32 2147483648, %v3028_v11  ;;  %v1070_v50 = vpop.permute.xlu2 %1069 }
 0x120   : > { %v2291_v29 = vpop.eup %2290  ;;  %v436_v60 = vsel %vm434_vm12, %v4076_v18, %v433_v5  ;;  %v626_v54 = vmul.f32 %v625_v34, %v3070_v32  ;;  %v880_v5 = vmul.f32 %v879_v25, %v3016_v7  ;;  %v1082_v1 = vsub.f32 %v1070_v50, %v2721_v36 }
 0x121   : > { %v3182_v15 = vsel %vm713_vm11, %v4077_v51, %v3081_v43  ;;  %v448_v46 = vsel %vm446_vm13, %v4078_v20, %v445_v23  ;;  %v887_v16 = vmul.f32 %v2291_v29, %v3131_v63  ;;  %1766 = vperm.xlu2 %2248, %v2829_v47   ;;  %v638_v43 = vmul.f32 %v637_v9, %v3073_v19 }
 0x122   : > { %v3195_v48 = vmul.f32 %v969_v21, %v958_v31  ;;  %v3199_v23 = vmul.f32 %v703_v0, %v2919_v27  ;;  %v4079_v34 = vmov 1   ;;  %v477_v25 = vmul.f32 %v436_v60, %v3025_v38  ;;  %v1074_v31 = vpop.permute.xlu0 %1073 }
 0x123   : > { %2249 = vset.pattern.permute.xlu1 %v4079_v34  ;;  %v628_v18 = vsel %vm627_vm15, %v3070_v32, %v626_v54  ;;  %v882_v47 = vsel %vm881_vm14, %v3016_v7, %v880_v5  ;;  %v888_v9 = vmul.f32 %v2291_v29, %v887_v16  ;;  %v2293_v51 = vpop.eup %2292  ;;  %v478_v27 = vmul.f32 %v448_v46, %v3028_v11 }
 0x124   : > { %1795 = vperm.xlu1 %2249, %v3115_v10   ;;  %v631_v0 = vsel %vm629_vm0, %v630_v6, %v628_v18  ;;  %v640_v38 = vsel %vm639_vm2, %v3073_v19, %v638_v43  ;;  %v4080_v60 = vand.u32 2147483648, %v3016_v7  ;;  %vm893_vm4 = vcmp.eq.f32.partialorder %v3131_v63, inf }
 0x125   : > { %v643_v11 = vsel %vm641_vm3, %v642_v17, %v640_v38  ;;  %v889_v10 = vmul.f32 0.5, %v888_v9  ;;  %vm895_vm5 = vcmp.eq.f32.partialorder %v3131_v63, 0.0  ;;  %v896_v6 = vand.u32 2147483648, %v3131_v63 }
 0x126   : > { %v885_v20 = vsel %vm883_vm1, %v4080_v60, %v882_v47  ;;  %v899_v46 = vmul.f32 %v2293_v51, %v3140_v3  ;;  %v908_v54 = vand.u32 2147483648, %v3140_v3  ;;  %v1084_v16 = vsub.f32 %v1074_v31, %v2721_v36 }
 0x127   : > { %v959_v5 = vmul.f32 %v885_v20, %v3016_v7  ;;  %v1085_v43 = vsub.f32 %v1074_v31, %v2723_v37  ;;  %v716_v18 = vmul.f32 %v631_v0, %v3070_v32  ;;  %v890_v47 = vsub.f32 1.5, %v889_v10 }
 0x128   : > { %v900_v17 = vmul.f32 %v2293_v51, %v899_v46  ;;  %v268_v9 = vstv %s3170_s23  ;;  %v717_v38 = vmul.f32 %v643_v11, %v3073_v19  ;;  %vm905_vm6 = vcmp.eq.f32.partialorder %v3140_v3, inf  ;;  %v2366_v11 = vld [vmem:[%s2681_s6] sm:$0xf]  ;;  %s2492_s6 = scalar_lea.hbm %s4056_s4, 4 }
 0x129   : > { %v3236_v60 = vmul.f32 %v969_v21, %v959_v5  ;;  %v1083_v61 = vsub.f32 %v1070_v50, %v2723_v37  ;;  %v3239_v62 = vmul.f32 %v1082_v1, %v1082_v1  ;;  %v891_v7 = vmul.f32 %v2291_v29, %v890_v47  ;;  %2251 = vset.pattern.permute.xlu2 %v4079_v34  ;;  %p2494_p8 = scmp.lt.s32.totalorder %s2492_s6, %s2488_s28 }
 0x12a   : > { %v901_v20 = vmul.f32 0.5, %v900_v17  ;;  %vm907_vm7 = vcmp.eq.f32.partialorder %v3140_v3, 0.0  ;;  %v273_v32 = vstv %s3191_s20  ;;  %v505_v31 = vmul.f32 %v2737_v52, %v477_v25 }
 0x12b   : > { %v1092_v0 = vmul.f32 %v1084_v16, %v1084_v16  ;;  %v1093_v19 = vmul.f32 %v1085_v43, %v1085_v43  ;;  %v269_v10 = vmul.f32 %v2366_v11, %v268_v9  ;;  %v506_v21 = vmul.f32 %v2737_v52, %v478_v27  ;;  %v3257_v27 = vpop.permute.xlu1 %983  ;;  %p2495_p7 = por %p2494_p8, %p2493_p12 }
 0x12c   : > { %v892_v50 = vmul.f32 %v891_v7, %v3131_v63  ;;  %v902_v1 = vsub.f32 1.5, %v901_v20  ;;  %v510_v29 = vadd.f32 %v2849_v58, %v505_v31  ;;  %v744_v46 = vmul.f32 %v2824_v39, %v716_v18  ;;  %2250 = vset.pattern.permute.xlu1 %v4073_v59 }
 0x12d   : > { %v270_v5 = vstv %s3221_s5  ;;  %v274_v47 = vmul.f32 %v2366_v11, %v273_v32  ;;  %v519_v25 = vadd.f32 %v2851_v8, %v506_v21  ;;  %v745_v34 = vmul.f32 %v2824_v39, %v717_v38  ;;  %p2496_p9 = pnand %p2495_p7, %p2491_p5 }
 0x12e   : > { %v894_v16 = vsel %vm893_vm4, %v3131_v63, %v892_v50  ;;  %v903_v52 = vmul.f32 %v2293_v51, %v902_v1  ;;  %v511_v43 = vadd.f32 %v510_v29, %v2871_v30  ;;  %v746_v58 = vmul.f32 %v2784_v49, %v3054_v53 }
 0x12f   : > { %v897_v18 = vsel %vm895_vm5, %v896_v6, %v894_v16  ;;  %v520_v17 = vadd.f32 %v519_v25, %v2878_v35  ;;  %v723_v39 = vmul.f32 %v3182_v15, %v2921_v56  ;;  %v747_v8 = vmul.f32 %v2784_v49, %v3062_v28 }
 0x130   : > { %v904_v51 = vmul.f32 %v903_v52, %v3140_v3  ;;  %v960_v9 = vmul.f32 %v897_v18, %v3131_v63  ;;  %v512_v38 = vrot.slane %v511_v43, 4  ;;  %v752_v30 = vadd.f32 %v746_v58, %v744_v46 }
 0x131   : > { %v521_v7 = vrot.slane %v520_v17, 4  ;;  %v750_v53 = vmul.f32 %v2864_v22, %v3199_v23  ;;  %v761_v20 = vadd.f32 %v747_v8, %v745_v34  ;;  %2294 = vrsqrt.f32 %v3093_v2 }
 0x132   : > { %v906_v35 = vsel %vm905_vm6, %v3140_v3, %v904_v51  ;;  %v988_v56 = vmul.f32 %v3018_v33, %v960_v9  ;;  %v513_v49 = vadd.f32 %v512_v38, %v511_v43  ;;  %v753_v28 = vadd.f32 %v752_v30, %v2981_v55 }
 0x133   : > { %v909_v63 = vsel %vm907_vm7, %v908_v54, %v906_v35  ;;  %v522_v15 = vadd.f32 %v521_v7, %v520_v17  ;;  %v751_v6 = vmul.f32 %v2864_v22, %v723_v39  ;;  %v762_v23 = vadd.f32 %v761_v20, %v2983_v26  ;;  %v1511_v22 = vld [vmem:[#allocation8 + $0xb8] sm:$0xff] }
 0x134   : > { %v961_v32 = vmul.f32 %v909_v63, %v3140_v3  ;;  %v3285_v31 = vadd.f32 %v988_v56, %v3195_v48  ;;  %v514_v11 = vrot.slane %v513_v49, 2  ;;  %v754_v21 = vadd.f32 %v753_v28, %v750_v53  ;;  %1709 = vperm.xlu0 %2252, %v1511_v22   ;;  %v1748_v7 = vld [vmem:[#allocation6 + $0xd8] sm:$0xff]  ;;  %v3305_v56 = vpop.permute.xlu2 %1210 }
 0x135   : > { %v271_v50 = vadd.f32 %v270_v5, %v269_v10  ;;  %v523_v1 = vrot.slane %v522_v15, 2  ;;  %v763_v29 = vadd.f32 %v762_v23, %v751_v6  ;;  %2296 = vrsqrt.f32 %v3099_v13  ;;  %1771 = vperm.xlu1 %2250, %v1748_v7   ;;  %1803 = vperm.xlu2 %2251, %v1748_v7  }
 0x136   : > { %v989_v55 = vmul.f32 %v3018_v33, %v961_v32  ;;  %v2135_v54 = vrot.slane %v274_v47, 9  ;;  %v515_v46 = vadd.f32 %v514_v11, %v513_v49  ;;  %v755_v25 = vrot.slane %v754_v21, 4  ;;  %v1036_v47 = vpop.permute.xlu1 %1035 }
 0x137   : > { %v2295_v34 = vpop.eup %2294  ;;  %v1091_v26 = vmul.f32 %v1083_v61, %v1083_v61  ;;  %v3290_v3 = vadd.f32 %v1092_v0, %v3165_v42  ;;  %v524_v48 = vadd.f32 %v523_v1, %v522_v15  ;;  %v764_v16 = vrot.slane %v763_v29, 4 }
 0x138   : > { %v3293_v10 = vadd.f32 %v989_v55, %v3236_v60  ;;  %v3296_v5 = vadd.f32 %v1093_v19, %v3167_v12  ;;  %v756_v52 = vadd.f32 %v755_v25, %v754_v21  ;;  %v911_v33 = vmul.f32 %v2295_v34, %v3093_v2 }
 0x139   : > { %v516_v43 = vrot.slane %v515_v46, 1  ;;  %v525_v58 = vrot.slane %v524_v48, 1  ;;  %v765_v18 = vadd.f32 %v764_v16, %v763_v29  ;;  %2298 = vrsqrt.f32 %v3044_v40 }
 0x13a   : > { %vm530_vm8 = vcmask 1041408   ;;  %v279_v61 = vadd.f32 %v2135_v54, %v271_v50  ;;  %v757_v42 = vrot.slane %v756_v52, 2  ;;  %v912_v0 = vmul.f32 %v2295_v34, %v911_v33 }
 0x13b   : > { %v2297_v17 = vpop.eup %2296  ;;  %v526_v39 = vadd.f32 %v525_v58, %v524_v48  ;;  %v766_v60 = vrot.slane %v765_v18, 2  ;;  %vm917_vm9 = vcmp.eq.f32.partialorder %v3093_v2, inf  ;;  %2300 = vrsqrt.f32 %v3046_v24 }
 0x13c   : > { %v758_v12 = vadd.f32 %v757_v42, %v756_v52  ;;  %v913_v19 = vmul.f32 0.5, %v912_v0  ;;  %vm919_vm10 = vcmp.eq.f32.partialorder %v3093_v2, 0.0  ;;  %v923_v8 = vmul.f32 %v2297_v17, %v3099_v13 }
 0x13d   : > { %v517_v51 = vadd.f32 %v516_v43, %v515_v46  ;;  %v529_v9 = vrot.slane %v526_v39, 6  ;;  %v767_v38 = vadd.f32 %v766_v60, %v765_v18  ;;  %v920_v30 = vand.u32 2147483648, %v3093_v2  ;;  %2253 = vset.pattern.permute.xlu2 %v4073_v59 }
 0x13e   : > { %v759_v53 = vrot.slane %v758_v12, 1  ;;  %v914_v20 = vsub.f32 1.5, %v913_v19  ;;  %v924_v35 = vmul.f32 %v2297_v17, %v923_v8  ;;  %v1050_v49 = vsub.f32 %v1036_v47, %v2729_v44  ;;  %v1066_v55 = vpop.permute.xlu1 %1065 }
 0x13f   : > { %v2299_v28 = vpop.eup %2298  ;;  %v531_v63 = vsel %vm530_vm8, %v517_v51, %v529_v9  ;;  %v768_v15 = vrot.slane %v767_v38, 1  ;;  %v1051_v6 = vsub.f32 %v1036_v47, %v2731_v45  ;;  %2302 = vrsqrt.f32 %v3290_v3 }
 0x140   : > { %v915_v23 = vmul.f32 %v2295_v34, %v914_v20  ;;  %v925_v32 = vmul.f32 0.5, %v924_v35  ;;  %vm929_vm11 = vcmp.eq.f32.partialorder %v3099_v13, inf  ;;  %vm931_vm12 = vcmp.eq.f32.partialorder %v3099_v13, 0.0 }
 0x141   : > { %v2301_v11 = vpop.eup %2300  ;;  %v769_v21 = vadd.f32 %v768_v15, %v767_v38  ;;  %v935_v50 = vmul.f32 %v2299_v28, %v3044_v40  ;;  %v1058_v1 = vmul.f32 %v1050_v49, %v1050_v49  ;;  %v1059_v29 = vmul.f32 %v1051_v6, %v1051_v6 }
 0x142   : > { %v760_v54 = vadd.f32 %v759_v53, %v758_v12  ;;  %v916_v46 = vmul.f32 %v915_v23, %v3093_v2  ;;  %v926_v25 = vsub.f32 1.5, %v925_v32  ;;  %v947_v22 = vmul.f32 %v2301_v11, %v3046_v24 }
 0x143   : > { %v772_v48 = vrot.slane %v769_v21, 6  ;;  %v936_v34 = vmul.f32 %v2299_v28, %v935_v50  ;;  %v3317_v16 = vadd.f32 %v3239_v62, %v1058_v1  ;;  %v3319_v52 = vadd.f32 %v1091_v26, %v1059_v29  ;;  %v1509_v62 = vld [vmem:[#allocation8 + $0xa8] sm:$0xff]  ;;  %v1750_v21 = vld [vmem:[#allocation8 + $0xc0] sm:$0xff] }
 0x144   : > { %v533_v33 = vadd.f32 %v531_v63, %v279_v61  ;;  %v918_v47 = vsel %vm917_vm9, %v3093_v2, %v916_v46  ;;  %v927_v43 = vmul.f32 %v2297_v17, %v926_v25  ;;  %v948_v58 = vmul.f32 %v2301_v11, %v947_v22  ;;  %1699 = vperm.xlu1 %2250, %v1509_v62  }
 0x145   : > { %v2303_v18 = vpop.eup %2302  ;;  %v773_v42 = vsel %vm530_vm8, %v760_v54, %v772_v48  ;;  %v921_v0 = vsel %vm919_vm10, %v920_v30, %v918_v47  ;;  %v932_v39 = vand.u32 2147483648, %v3099_v13  ;;  %v937_v60 = vmul.f32 0.5, %v936_v34 }
 0x146   : > { %v3328_v12 = vadd.f32 %v773_v42, %v533_v33  ;;  %v928_v26 = vmul.f32 %v927_v43, %v3099_v13  ;;  %v949_v61 = vmul.f32 0.5, %v948_v58  ;;  %v962_v19 = vmul.f32 %v921_v0, %v3093_v2  ;;  %v3341_v2 = vpop.permute.xlu2 %1220  ;;  %v1078_v20 = vpop.permute.xlu1 %1077 }
 0x147   : > { %v938_v17 = vsub.f32 1.5, %v937_v60  ;;  %vm941_vm13 = vcmp.eq.f32.partialorder %v3044_v40, inf  ;;  %v1153_v8 = vmul.f32 %v2303_v18, %v3290_v3  ;;  %2304 = vrsqrt.f32 %v3296_v5 }
 0x148   : > { %v930_v51 = vsel %vm929_vm11, %v3099_v13, %v928_v26  ;;  %vm943_vm14 = vcmp.eq.f32.partialorder %v3044_v40, 0.0  ;;  %v950_v9 = vsub.f32 1.5, %v949_v61  ;;  %v990_v38 = vmul.f32 %v2842_v4, %v962_v19 }
 0x149   : > { %v933_v59 = vsel %vm931_vm12, %v932_v39, %v930_v51  ;;  %v939_v30 = vmul.f32 %v2299_v28, %v938_v17  ;;  %v944_v7 = vand.u32 2147483648, %v3044_v40  ;;  %v1154_v53 = vmul.f32 %v2303_v18, %v1153_v8 }
 0x14a   : > { %v951_v35 = vmul.f32 %v2301_v11, %v950_v9  ;;  %v963_v49 = vmul.f32 %v933_v59, %v3099_v13  ;;  %v995_v63 = vadd.f32 %v3285_v31, %v990_v38  ;;  %v1080_v15 = vsub.f32 %v1066_v55, %v2721_v36  ;;  %v4081_v59 = vld [vmem:[#allocation18_spill] sm:$0xff] }
 0x14b   : > { %v940_v6 = vmul.f32 %v939_v30, %v3044_v40  ;;  %vm953_vm15 = vcmp.eq.f32.partialorder %v3046_v24, inf  ;;  %v1155_v23 = vmul.f32 0.5, %v1154_v53  ;;  %v1081_v32 = vsub.f32 %v1066_v55, %v2723_v37 }
 0x14c   : > { %v952_v28 = vmul.f32 %v951_v35, %v3046_v24  ;;  %vm955_vm0 = vcmp.eq.f32.partialorder %v3046_v24, 0.0  ;;  %v991_v11 = vmul.f32 %v2842_v4, %v963_v49  ;;  %v1088_v50 = vmul.f32 %v1080_v15, %v1080_v15  ;;  %1936 = vperm.xlu1 %2250, %v1750_v21   ;;  %v1751_v21 = vld [vmem:[#allocation8 + $0xc8] sm:$0xff] }
 0x14d   : > { %v2305_v13 = vpop.eup %2304  ;;  %v942_v31 = vsel %vm941_vm13, %v3044_v40, %v940_v6  ;;  %v956_v1 = vand.u32 2147483648, %v3046_v24  ;;  %v1156_v29 = vsub.f32 1.5, %v1155_v23  ;;  %v1089_v54 = vmul.f32 %v1081_v32, %v1081_v32 }
 0x14e   : > { %v945_v55 = vsel %vm943_vm14, %v944_v7, %v942_v31  ;;  %v954_v46 = vsel %vm953_vm15, %v3046_v24, %v952_v28  ;;  %v1004_v25 = vadd.f32 %v3293_v10, %v991_v11  ;;  %v1165_v22 = vmul.f32 %v2305_v13, %v3296_v5  ;;  %v3382_v60 = vpop.permute.xlu2 %1277  ;;  %v1752_v7 = vld [vmem:[#allocation8 + $0xd0] sm:$0xff] }
 0x14f   : > { %v957_v4 = vsel %vm955_vm0, %v956_v1, %v954_v46  ;;  %v964_v48 = vmul.f32 %v945_v55, %v3044_v40  ;;  %v1157_v34 = vmul.f32 %v2303_v18, %v1156_v29  ;;  %v3366_v33 = vadd.f32 %v1088_v50, %v3096_v41  ;;  %v3377_v18 = vpop.permute.xlu1 %1215 }
 0x150   : > { %v965_v47 = vmul.f32 %v957_v4, %v3046_v24  ;;  %vm1159_vm1 = vcmp.eq.f32.partialorder %v3290_v3, inf  ;;  %v1166_v43 = vmul.f32 %v2305_v13, %v1165_v22  ;;  %v3371_v58 = vadd.f32 %v1089_v54, %v3109_v14  ;;  %v1510_v14 = vld [vmem:[#allocation8 + $0xb0] sm:$0xff] }
 0x151   : > { %v992_v10 = vmul.f32 %v3257_v27, %v964_v48  ;;  %v1158_v42 = vmul.f32 %v1157_v34, %v3290_v3  ;;  %v1086_v0 = vsub.f32 %v1078_v20, %v2721_v36  ;;  %v1087_v40 = vsub.f32 %v1078_v20, %v2723_v37  ;;  %1704 = vperm.xlu2 %2253, %v1510_v14  }
 0x152   : > { %v993_v41 = vmul.f32 %v3257_v27, %v965_v47  ;;  %vm1161_vm2 = vcmp.eq.f32.partialorder %v3290_v3, 0.0  ;;  %v1162_v24 = vand.u32 2147483648, %v3290_v3  ;;  %v1167_v39 = vmul.f32 0.5, %v1166_v43 }
 0x153   : > { %v996_v62 = vadd.f32 %v995_v63, %v992_v10  ;;  %v1160_v26 = vsel %vm1159_vm1, %v3290_v3, %v1158_v42  ;;  %v1094_v61 = vmul.f32 %v1086_v0, %v1086_v0  ;;  %v1095_v19 = vmul.f32 %v1087_v40, %v1087_v40 }
 0x154   : > { %v1005_v17 = vadd.f32 %v1004_v25, %v993_v41  ;;  %v1163_v8 = vsel %vm1161_vm2, %v1162_v24, %v1160_v26  ;;  %v1168_v51 = vsub.f32 1.5, %v1167_v39  ;;  %2306 = vrsqrt.f32 %v3366_v33  ;;  %1946 = vperm.xlu1 %2250, %v1752_v7  }
 0x155   : > { %v997_v9 = vrot.slane %v996_v62, 4  ;;  %v1204_v27 = vmul.f32 %v1163_v8, %v3290_v3  ;;  %v3387_v38 = vadd.f32 %v1094_v61, %v2992_v57  ;;  %v3390_v30 = vadd.f32 %v1095_v19, %v4081_v59  ;;  %v1753_v61 = vld [vmem:[#allocation8 + $0xd8] sm:$0xff] }
 0x156   : > { %v1006_v53 = vrot.slane %v1005_v17, 4  ;;  %v1169_v20 = vmul.f32 %v2305_v13, %v1168_v51  ;;  %vm1171_vm3 = vcmp.eq.f32.partialorder %v3296_v5, inf  ;;  %v1174_v15 = vand.u32 2147483648, %v3296_v5  ;;  %v3408_v1 = vpop.permute.xlu2 %1287 }
 0x157   : > { %v998_v35 = vadd.f32 %v997_v9, %v996_v62  ;;  %v3394_v49 = vmul.f32 %v3341_v2, %v1204_v27  ;;  %2308 = vrsqrt.f32 %v3387_v38  ;;  %vm1173_vm4 = vcmp.eq.f32.partialorder %v3296_v5, 0.0  ;;  %v3404_v32 = vpop.permute.xlu1 %1272 }
 0x158   : > { %v1007_v63 = vadd.f32 %v1006_v53, %v1005_v17  ;;  %v1170_v3 = vmul.f32 %v1169_v20, %v3296_v5  ;;  %2310 = vrsqrt.f32 %v3390_v30  ;;  %vm1111_vm5 = vcmp.eq.f32.partialorder %v3366_v33, inf }
 0x159   : > { %v999_v57 = vrot.slane %v998_v35, 2  ;;  %2312 = vrsqrt.f32 %v3371_v58  ;;  %1941 = vperm.xlu2 %2253, %v1751_v21   ;;  %v1126_v10 = vand.u32 2147483648, %v3371_v58  ;;  %vm1113_vm6 = vcmp.eq.f32.partialorder %v3366_v33, 0.0 }
 0x15a   : > { %v1008_v6 = vrot.slane %v1007_v63, 2  ;;  %v1172_v23 = vsel %vm1171_vm3, %v3296_v5, %v1170_v3  ;;  %2314 = vrsqrt.f32 %v3317_v16  ;;  %v2307_v50 = vpop.eup %2306  ;;  %vm1123_vm7 = vcmp.eq.f32.partialorder %v3371_v58, inf }
 0x15b   : > { %v1000_v28 = vadd.f32 %v999_v57, %v998_v35  ;;  %v1175_v11 = vsel %vm1173_vm4, %v1174_v15, %v1172_v23  ;;  %v1105_v54 = vmul.f32 %v2307_v50, %v3366_v33  ;;  %2316 = vrsqrt.f32 %v3319_v52 }
 0x15c   : > { %v1009_v13 = vadd.f32 %v1008_v6, %v1007_v63  ;;  %v1205_v31 = vmul.f32 %v1175_v11, %v3296_v5  ;;  %v1114_v5 = vand.u32 2147483648, %v3366_v33  ;;  %vm1183_vm9 = vcmp.eq.f32.partialorder %v3387_v38, inf }
 0x15d   : > { %v2309_v29 = vpop.eup %2308  ;;  %v1001_v46 = vrot.slane %v1000_v28, 1  ;;  %v1106_v48 = vmul.f32 %v2307_v50, %v1105_v54  ;;  %vm1125_vm10 = vcmp.eq.f32.partialorder %v3371_v58, 0.0  ;;  %vm1135_vm11 = vcmp.eq.f32.partialorder %v3317_v16, inf }
 0x15e   : > { %v2311_v55 = vpop.eup %2310  ;;  %v1010_v25 = vrot.slane %v1009_v13, 1  ;;  %v3413_v22 = vmul.f32 %v3341_v2, %v1205_v31  ;;  %v1177_v34 = vmul.f32 %v2309_v29, %v3387_v38  ;;  %v1138_v2 = vand.u32 2147483648, %v3317_v16  ;;  %v3437_v6 = vpop.permute.xlu2 %1315 }
 0x15f   : > { %v2313_v4 = vpop.eup %2312  ;;  %v1107_v0 = vmul.f32 0.5, %v1106_v48  ;;  %v1189_v41 = vmul.f32 %v2311_v55, %v3390_v30  ;;  %v1002_v24 = vadd.f32 %v1001_v46, %v1000_v28  ;;  %v3424_v26 = vpop.permute.xlu1 %1282  ;;  %vm1137_vm12 = vcmp.eq.f32.partialorder %v3317_v16, 0.0 }
 0x160   : > { %v1011_v47 = vadd.f32 %v1010_v25, %v1009_v13  ;;  %v1117_v43 = vmul.f32 %v2313_v4, %v3371_v58  ;;  %v2315_v42 = vpop.eup %2314  ;;  %v1178_v40 = vmul.f32 %v2309_v29, %v1177_v34  ;;  %vm1185_vm13 = vcmp.eq.f32.partialorder %v3387_v38, 0.0 }
 0x161   : > { %v1129_v62 = vmul.f32 %v2315_v42, %v3317_v16  ;;  %v2317_v19 = vpop.eup %2316  ;;  %v1108_v17 = vsub.f32 1.5, %v1107_v0  ;;  %v1190_v51 = vmul.f32 %v2311_v55, %v1189_v41  ;;  %1951 = vperm.xlu2 %2253, %v1753_v61   ;;  %vm1147_vm14 = vcmp.eq.f32.partialorder %v3319_v52, inf }
 0x162   : > { %v1014_v39 = vrot.slane %v1011_v47, 6  ;;  %v1118_v14 = vmul.f32 %v2313_v4, %v1117_v43  ;;  %v1179_v8 = vmul.f32 0.5, %v1178_v40  ;;  %v1141_v7 = vmul.f32 %v2317_v19, %v3319_v52 }
 0x163   : > { %v1130_v59 = vmul.f32 %v2315_v42, %v1129_v62  ;;  %v1109_v20 = vmul.f32 %v2307_v50, %v1108_v17  ;;  %v1191_v63 = vmul.f32 0.5, %v1190_v51  ;;  %v1186_v21 = vand.u32 2147483648, %v3387_v38  ;;  %v1308_v17 = vpop.permute.xlu0 %1307 }
 0x164   : > { %v1015_v9 = vsel %vm530_vm8, %v1002_v24, %v1014_v39  ;;  %v1119_v27 = vmul.f32 0.5, %v1118_v14  ;;  %v1180_v35 = vsub.f32 1.5, %v1179_v8  ;;  %v1142_v15 = vmul.f32 %v2317_v19, %v1141_v7 }
 0x165   : > { %v3432_v53 = vadd.f32 %v1015_v9, %v3328_v12  ;;  %v1131_v57 = vmul.f32 0.5, %v1130_v59  ;;  %v1110_v23 = vmul.f32 %v1109_v20, %v3366_v33  ;;  %v1192_v28 = vsub.f32 1.5, %v1191_v63 }
 0x166   : > { %v1120_v3 = vsub.f32 1.5, %v1119_v27  ;;  %v1181_v12 = vmul.f32 %v2309_v29, %v1180_v35  ;;  %v1143_v13 = vmul.f32 0.5, %v1142_v15  ;;  %vm1195_vm15 = vcmp.eq.f32.partialorder %v3390_v30, inf  ;;  %v3494_v20 = vpop.permute.xlu2 %1452 }
 0x167   : > { %v1132_v50 = vsub.f32 1.5, %v1131_v57  ;;  %v1112_v31 = vsel %vm1111_vm5, %v3366_v33, %v1110_v23  ;;  %v1193_v46 = vmul.f32 %v2311_v55, %v1192_v28  ;;  %vm1197_vm0 = vcmp.eq.f32.partialorder %v3390_v30, 0.0  ;;  %v1312_v55 = vpop.permute.xlu1 %1311 }
 0x168   : > { %v1121_v11 = vmul.f32 %v2313_v4, %v1120_v3  ;;  %v1182_v54 = vmul.f32 %v1181_v12, %v3387_v38  ;;  %v1115_v29 = vsel %vm1113_vm6, %v1114_v5, %v1112_v31  ;;  %v1144_v4 = vsub.f32 1.5, %v1143_v13  ;;  %v4082_v12 = vld [vmem:[#allocation15_spill] sm:$0xff] }
 0x169   : > { %v1133_v48 = vmul.f32 %v2315_v42, %v1132_v50  ;;  %v1194_v47 = vmul.f32 %v1193_v46, %v3390_v30  ;;  %v1198_v43 = vand.u32 2147483648, %v3390_v30  ;;  %v1200_v0 = vmul.f32 %v1115_v29, %v3366_v33 }
 0x16a   : > { %v1122_v25 = vmul.f32 %v1121_v11, %v3371_v58  ;;  %v1184_v34 = vsel %vm1183_vm9, %v3387_v38, %v1182_v54  ;;  %v1145_v41 = vmul.f32 %v2317_v19, %v1144_v4  ;;  %v1290_v42 = vsub.f32 %v3404_v32, %v2729_v44 }
 0x16b   : > { %v1134_v5 = vmul.f32 %v1133_v48, %v3317_v16  ;;  %v1187_v39 = vsel %vm1185_vm13, %v1186_v21, %v1184_v34  ;;  %v1196_v33 = vsel %vm1195_vm15, %v3390_v30, %v1194_v47  ;;  %v1228_v14 = vmul.f32 %v3305_v56, %v1200_v0  ;;  %v4083_v34 = vld [vmem:[#allocation17_spill] sm:$0xff] }
 0x16c   : > { %v1124_v40 = vsel %vm1123_vm7, %v3371_v58, %v1122_v25  ;;  %v1146_v61 = vmul.f32 %v1145_v41, %v3319_v52  ;;  %v1199_v19 = vsel %vm1197_vm0, %v1198_v43, %v1196_v33  ;;  %vm1149_vm1 = vcmp.eq.f32.partialorder %v3319_v52, 0.0 }
 0x16d   : > { %v1127_v24 = vsel %vm1125_vm10, %v1126_v10, %v1124_v40  ;;  %v1136_v62 = vsel %vm1135_vm11, %v3317_v16, %v1134_v5  ;;  %v1150_v51 = vand.u32 2147483648, %v3319_v52  ;;  %v1291_v9 = vsub.f32 %v3404_v32, %v2731_v45 }
 0x16e   : > { %v1201_v10 = vmul.f32 %v1127_v24, %v3371_v58  ;;  %v1139_v8 = vsel %vm1137_vm12, %v1138_v2, %v1136_v62  ;;  %v1148_v27 = vsel %vm1147_vm14, %v3319_v52, %v1146_v61  ;;  %v1206_v58 = vmul.f32 %v1187_v39, %v3387_v38  ;;  %v3517_v4 = vpop.permute.xlu2 %1467 }
 0x16f   : > { %v1202_v59 = vmul.f32 %v1139_v8, %v3317_v16  ;;  %v1151_v2 = vsel %vm1149_vm1, %v1150_v51, %v1148_v27  ;;  %v1207_v35 = vmul.f32 %v1199_v19, %v3390_v30  ;;  %v1298_v63 = vmul.f32 %v1290_v42, %v1290_v42  ;;  %v1320_v11 = vpop.permute.xlu1 %1319 }
 0x170   : > { %v1229_v7 = vmul.f32 %v3305_v56, %v1201_v10  ;;  %v1322_v3 = vsub.f32 %v1308_v17, %v2721_v36  ;;  %v1203_v32 = vmul.f32 %v1151_v2, %v3319_v52  ;;  %v1299_v15 = vmul.f32 %v1291_v9, %v1291_v9 }
 0x171   : > { %v1230_v57 = vmul.f32 %v3377_v18, %v1202_v59  ;;  %v1323_v23 = vsub.f32 %v1308_v17, %v2723_v37  ;;  %v1234_v56 = vmul.f32 %v4082_v12, %v1206_v58  ;;  %v1235_v30 = vmul.f32 %v4082_v12, %v1207_v35 }
 0x172   : > { %v1330_v16 = vmul.f32 %v1322_v3, %v1322_v3  ;;  %v1231_v38 = vmul.f32 %v3377_v18, %v1203_v32  ;;  %v1292_v54 = vsub.f32 %v3382_v60, %v2729_v44  ;;  %v1293_v29 = vsub.f32 %v3382_v60, %v2731_v45 }
 0x173   : > { %v1236_v21 = vadd.f32 %v1230_v57, %v1228_v14  ;;  %v1331_v28 = vmul.f32 %v1323_v23, %v1323_v23  ;;  %v1324_v25 = vsub.f32 %v1312_v55, %v2721_v36  ;;  %v3521_v47 = vsub.f32 %v4083_v34, %v2729_v44 }
 0x174   : > { %v3503_v50 = vadd.f32 %v1330_v16, %v1298_v63  ;;  %v1245_v52 = vadd.f32 %v1231_v38, %v1229_v7  ;;  %v3525_v43 = vsub.f32 %v4083_v34, %v2731_v45  ;;  %v1297_v60 = vsub.f32 %v3408_v1, %v2731_v45 }
 0x175   : > { %v1237_v13 = vadd.f32 %v1236_v21, %v3394_v49  ;;  %v3507_v31 = vadd.f32 %v1331_v28, %v1299_v15  ;;  %v1300_v0 = vmul.f32 %v1292_v54, %v1292_v54  ;;  %v1325_v41 = vsub.f32 %v1312_v55, %v2723_v37  ;;  %v1554_v15 = vpop.permute.xlu0 %1553 }
 0x176   : > { %2318 = vrsqrt.f32 %v3503_v50  ;;  %v1246_v46 = vadd.f32 %v1245_v52, %v3413_v22  ;;  %v1296_v22 = vsub.f32 %v3408_v1, %v2729_v44  ;;  %v1301_v24 = vmul.f32 %v1293_v29, %v1293_v29 }
 0x177   : > { %v1238_v18 = vadd.f32 %v1237_v13, %v1234_v56  ;;  %2320 = vrsqrt.f32 %v3507_v31  ;;  %v1326_v39 = vsub.f32 %v3437_v6, %v2721_v36  ;;  %v1294_v33 = vsub.f32 %v3424_v26, %v2729_v44  ;;  %v3539_v17 = vpop.permute.xlu1 %1462  ;;  %v3551_v13 = vpop.permute.xlu2 %1519 }
 0x178   : > { %v1247_v49 = vadd.f32 %v1246_v46, %v1235_v30  ;;  %v1332_v14 = vmul.f32 %v1324_v25, %v1324_v25  ;;  %v1327_v1 = vsub.f32 %v3437_v6, %v2723_v37  ;;  %v1304_v55 = vmul.f32 %v1296_v22, %v1296_v22 }
 0x179   : > { %v1239_v48 = vrot.slane %v1238_v18, 4  ;;  %v1305_v8 = vmul.f32 %v1297_v60, %v1297_v60  ;;  %v1295_v9 = vsub.f32 %v3424_v26, %v2731_v45  ;;  %v1333_v7 = vmul.f32 %v1325_v41, %v1325_v41 }
 0x17a   : > { %v1248_v5 = vrot.slane %v1247_v49, 4  ;;  %v1334_v2 = vmul.f32 %v1326_v39, %v1326_v39  ;;  %v1302_v63 = vmul.f32 %v1294_v33, %v1294_v33  ;;  %v3544_v3 = vadd.f32 %v1332_v14, %v1300_v0 }
 0x17b   : > { %v1240_v40 = vadd.f32 %v1239_v48, %v1238_v18  ;;  %v1335_v32 = vmul.f32 %v1327_v1, %v1327_v1  ;;  %v1328_v23 = vsub.f32 %v1320_v11, %v2721_v36  ;;  %v1303_v38 = vmul.f32 %v1295_v9, %v1295_v9 }
 0x17c   : > { %v2319_v42 = vpop.eup %2318  ;;  %v1249_v19 = vadd.f32 %v1248_v5, %v1247_v49  ;;  %v1566_v12 = vsub.f32 %v1554_v15, %v2721_v36  ;;  %v1329_v26 = vsub.f32 %v1320_v11, %v2723_v37  ;;  %v3549_v30 = vadd.f32 %v1333_v7, %v1301_v24 }
 0x17d   : > { %v2321_v62 = vpop.eup %2320  ;;  %v1241_v61 = vrot.slane %v1240_v40, 2  ;;  %v1347_v10 = vmul.f32 %v2319_v42, %v3503_v50  ;;  %vm1353_vm2 = vcmp.eq.f32.partialorder %v3503_v50, inf  ;;  %v3554_v54 = vadd.f32 %v1334_v2, %v1302_v63 }
 0x17e   : > { %v1359_v51 = vmul.f32 %v2321_v62, %v3507_v31  ;;  %v1250_v59 = vrot.slane %v1249_v19, 2  ;;  %2322 = vrsqrt.f32 %v3544_v3  ;;  %vm1355_vm3 = vcmp.eq.f32.partialorder %v3503_v50, 0.0 }
 0x17f   : > { %v1242_v27 = vadd.f32 %v1241_v61, %v1240_v40  ;;  %v1348_v58 = vmul.f32 %v2319_v42, %v1347_v10  ;;  %v1336_v29 = vmul.f32 %v1328_v23, %v1328_v23  ;;  %v1356_v11 = vand.u32 2147483648, %v3503_v50  ;;  %v3563_v0 = vpop.permute.xlu1 %1514  ;;  %v1550_v10 = vpop.permute.xlu2 %1549 }
 0x180   : > { %v1360_v35 = vmul.f32 %v2321_v62, %v1359_v51  ;;  %v1251_v6 = vadd.f32 %v1250_v59, %v1249_v19  ;;  %v3559_v48 = vadd.f32 %v1335_v32, %v1303_v38  ;;  %v1337_v49 = vmul.f32 %v1329_v26, %v1329_v26 }
 0x181   : > { %v1349_v57 = vmul.f32 0.5, %v1348_v58  ;;  %v1243_v56 = vrot.slane %v1242_v27, 1  ;;  %2324 = vrsqrt.f32 %v3549_v30  ;;  %vm1365_vm4 = vcmp.eq.f32.partialorder %v3507_v31, inf }
 0x182   : > { %v1361_v16 = vmul.f32 0.5, %v1360_v35  ;;  %v1252_v21 = vrot.slane %v1251_v6, 1  ;;  %vm1367_vm5 = vcmp.eq.f32.partialorder %v3507_v31, 0.0  ;;  %2326 = vrsqrt.f32 %v3554_v54 }
 0x183   : > { %v1350_v28 = vsub.f32 1.5, %v1349_v57  ;;  %v1244_v34 = vadd.f32 %v1243_v56, %v1242_v27  ;;  %v3574_v24 = vadd.f32 %v1336_v29, %v1304_v55  ;;  %2328 = vrsqrt.f32 %v3559_v48 }
 0x184   : > { %v1362_v52 = vsub.f32 1.5, %v1361_v16  ;;  %v1253_v18 = vadd.f32 %v1252_v21, %v1251_v6  ;;  %v2323_v39 = vpop.eup %2322  ;;  %v3589_v55 = vmul.f32 %v3521_v47, %v3521_v47  ;;  %v1565_v27 = vsub.f32 %v1550_v10, %v2723_v37 }
 0x185   : > { %v1351_v46 = vmul.f32 %v2319_v42, %v1350_v28  ;;  %v1368_v42 = vand.u32 2147483648, %v3507_v31  ;;  %v1371_v51 = vmul.f32 %v2323_v39, %v3544_v3  ;;  %v3596_v59 = vmul.f32 %v3525_v43, %v3525_v43 }
 0x186   : > { %v1363_v25 = vmul.f32 %v2321_v62, %v1362_v52  ;;  %v1256_v22 = vrot.slane %v1253_v18, 6  ;;  %v3579_v62 = vadd.f32 %v1337_v49, %v1305_v8  ;;  %v1564_v8 = vsub.f32 %v1550_v10, %v2721_v36 }
 0x187   : > { %v1352_v60 = vmul.f32 %v1351_v46, %v3503_v50  ;;  %v1372_v58 = vmul.f32 %v2323_v39, %v1371_v51  ;;  %2330 = vrsqrt.f32 %v3574_v24  ;;  %v3608_v2 = vmul.f32 %v1566_v12, %v1566_v12  ;;  %v3617_v32 = vpop.permute.xlu1 %1529 }
 0x188   : > { %v1364_v40 = vmul.f32 %v1363_v25, %v3507_v31  ;;  %v1257_v5 = vsel %vm530_vm8, %v1244_v34, %v1256_v22  ;;  %v3613_v43 = vsub.f32 %v3551_v13, %v2729_v44  ;;  %2332 = vrsqrt.f32 %v3579_v62 }
 0x189   : > { %v1354_v41 = vsel %vm1353_vm2, %v3503_v50, %v1352_v60  ;;  %v3582_v61 = vadd.f32 %v1257_v5, %v3432_v53  ;;  %v2325_v53 = vpop.eup %2324  ;;  %v1373_v63 = vmul.f32 0.5, %v1372_v58  ;;  %v3621_v57 = vmul.f32 %v1565_v27, %v1565_v27 }
 0x18a   : > { %v1357_v33 = vsel %vm1355_vm3, %v1356_v11, %v1354_v41  ;;  %v1366_v14 = vsel %vm1365_vm4, %v3507_v31, %v1364_v40  ;;  %v2327_v7 = vpop.eup %2326  ;;  %v1383_v35 = vmul.f32 %v2325_v53, %v3549_v30  ;;  %vm1377_vm6 = vcmp.eq.f32.partialorder %v3544_v3, inf }
 0x18b   : > { %v1369_v19 = vsel %vm1367_vm5, %v1368_v42, %v1366_v14  ;;  %v1442_v1 = vmul.f32 %v1357_v33, %v3503_v50  ;;  %v1395_v6 = vmul.f32 %v2327_v7, %v3554_v54  ;;  %v2329_v23 = vpop.eup %2328  ;;  %v1374_v16 = vsub.f32 1.5, %v1373_v63  ;;  %v1562_v14 = vpop.permute.xlu2 %1561 }
 0x18c   : > { %v1443_v9 = vmul.f32 %v1369_v19, %v3507_v31  ;;  %v3606_v31 = vsub.f32 %v1554_v15, %v2723_v37  ;;  %v1384_v15 = vmul.f32 %v2325_v53, %v1383_v35  ;;  %vm1379_vm7 = vcmp.eq.f32.partialorder %v3544_v3, 0.0 }
 0x18d   : > { %v3599_v50 = vmul.f32 %v3494_v20, %v1442_v1  ;;  %v1380_v38 = vand.u32 2147483648, %v3544_v3  ;;  %v1396_v12 = vmul.f32 %v2327_v7, %v1395_v6  ;;  %vm1389_vm9 = vcmp.eq.f32.partialorder %v3549_v30, inf  ;;  %v2331_v21 = vpop.eup %2330 }
 0x18e   : > { %v3603_v47 = vmul.f32 %v3494_v20, %v1443_v9  ;;  %v3619_v20 = vmul.f32 %v1564_v8, %v1564_v8  ;;  %v1385_v26 = vmul.f32 0.5, %v1384_v15  ;;  %vm1391_vm10 = vcmp.eq.f32.partialorder %v3549_v30, 0.0  ;;  %v2333_v25 = vpop.eup %2332 }
 0x18f   : > { %v1407_v56 = vmul.f32 %v2329_v23, %v3559_v48  ;;  %v1375_v28 = vmul.f32 %v2323_v39, %v1374_v16  ;;  %v1392_v52 = vand.u32 2147483648, %v3549_v30  ;;  %v1397_v18 = vmul.f32 0.5, %v1396_v12  ;;  %v3647_v9 = vpop.permute.xlu1 %1557  ;;  %v4084_v12 = vld [vmem:[#allocation16_spill] sm:$0xff] }
 0x190   : > { %vm1401_vm11 = vcmp.eq.f32.partialorder %v3554_v54, inf  ;;  %v1386_v46 = vsub.f32 1.5, %v1385_v26  ;;  %vm1403_vm12 = vcmp.eq.f32.partialorder %v3554_v54, 0.0  ;;  %v1419_v11 = vmul.f32 %v2331_v21, %v3574_v24 }
 0x191   : > { %v1408_v29 = vmul.f32 %v2329_v23, %v1407_v56  ;;  %v1376_v49 = vmul.f32 %v1375_v28, %v3544_v3  ;;  %v1398_v34 = vsub.f32 1.5, %v1397_v18  ;;  %v1404_v22 = vand.u32 2147483648, %v3554_v54 }
 0x192   : > { %vm1413_vm13 = vcmp.eq.f32.partialorder %v3559_v48, inf  ;;  %v1387_v60 = vmul.f32 %v2325_v53, %v1386_v46  ;;  %vm1415_vm14 = vcmp.eq.f32.partialorder %v3559_v48, 0.0  ;;  %v1420_v5 = vmul.f32 %v2331_v21, %v1419_v11 }
 0x193   : > { %v1409_v40 = vmul.f32 0.5, %v1408_v29  ;;  %v1431_v41 = vmul.f32 %v2333_v25, %v3579_v62  ;;  %v1378_v42 = vsel %vm1377_vm6, %v3544_v3, %v1376_v49  ;;  %v1399_v39 = vmul.f32 %v2327_v7, %v1398_v34  ;;  %v1792_v29 = vpop.permute.xlu0 %1791 }
 0x194   : > { %v1416_v33 = vand.u32 2147483648, %v3559_v48  ;;  %vm1425_vm15 = vcmp.eq.f32.partialorder %v3574_v24, inf  ;;  %v1381_v19 = vsel %vm1379_vm7, %v1380_v38, %v1378_v42  ;;  %v1388_v1 = vmul.f32 %v1387_v60, %v3549_v30 }
 0x195   : > { %v1410_v10 = vsub.f32 1.5, %v1409_v40  ;;  %v1421_v51 = vmul.f32 0.5, %v1420_v5  ;;  %vm1427_vm0 = vcmp.eq.f32.partialorder %v3574_v24, 0.0  ;;  %v1400_v8 = vmul.f32 %v1399_v39, %v3554_v54 }
 0x196   : > { %v1428_v27 = vand.u32 2147483648, %v3574_v24  ;;  %v1432_v53 = vmul.f32 %v2333_v25, %v1431_v41  ;;  %v1444_v58 = vmul.f32 %v1381_v19, %v3544_v3  ;;  %v1390_v7 = vsel %vm1389_vm9, %v3549_v30, %v1388_v1 }
 0x197   : > { %v1411_v35 = vmul.f32 %v2329_v23, %v1410_v10  ;;  %v1422_v63 = vsub.f32 1.5, %v1421_v51  ;;  %v1532_v6 = vsub.f32 %v3563_v0, %v2729_v44  ;;  %v1393_v15 = vsel %vm1391_vm10, %v1392_v52, %v1390_v7  ;;  %v3686_v42 = vpop.permute.xlu1 %1756 }
 0x198   : > { %v1402_v16 = vsel %vm1401_vm11, %v3554_v54, %v1400_v8  ;;  %v1433_v38 = vmul.f32 0.5, %v1432_v53  ;;  %v1472_v26 = vmul.f32 %v4084_v12, %v1444_v58  ;;  %v1445_v28 = vmul.f32 %v1393_v15, %v3549_v30 }
 0x199   : > { %v1405_v3 = vsel %vm1403_vm12, %v1404_v22, %v1402_v16  ;;  %v1412_v56 = vmul.f32 %v1411_v35, %v3559_v48  ;;  %v1423_v23 = vmul.f32 %v2331_v21, %v1422_v63  ;;  %vm1437_vm1 = vcmp.eq.f32.partialorder %v3579_v62, inf }
 0x19a   : > { %v1434_v18 = vsub.f32 1.5, %v1433_v38  ;;  %v1446_v52 = vmul.f32 %v1405_v3, %v3554_v54  ;;  %v1478_v46 = vadd.f32 %v1472_v26, %v3599_v50  ;;  %v1473_v34 = vmul.f32 %v4084_v12, %v1445_v28 }
 0x19b   : > { %v1414_v11 = vsel %vm1413_vm13, %v3559_v48, %v1412_v56  ;;  %v1424_v49 = vmul.f32 %v1423_v23, %v3574_v24  ;;  %v1533_v21 = vsub.f32 %v3563_v0, %v2731_v45  ;;  %v1540_v60 = vmul.f32 %v1532_v6, %v1532_v6  ;;  %v1800_v12 = vpop.permute.xlu0 %1799 }
 0x19c   : > { %v1417_v30 = vsel %vm1415_vm14, %v1416_v33, %v1414_v11  ;;  %v1435_v22 = vmul.f32 %v2333_v25, %v1434_v18  ;;  %v1474_v54 = vmul.f32 %v3539_v17, %v1446_v52  ;;  %v1487_v5 = vadd.f32 %v1473_v34, %v3603_v47  ;;  %v3691_v33 = vpop.permute.xlu2 %1761 }
 0x19d   : > { %v1426_v50 = vsel %vm1425_vm15, %v3574_v24, %v1424_v49  ;;  %v1447_v40 = vmul.f32 %v1417_v30, %v3559_v48  ;;  %v1570_v41 = vsub.f32 %v1562_v14, %v2721_v36  ;;  %v1538_v19 = vsub.f32 %v3617_v32, %v2729_v44 }
 0x19e   : > { %v1429_v0 = vsel %vm1427_vm0, %v1428_v27, %v1426_v50  ;;  %v1436_v25 = vmul.f32 %v1435_v22, %v3579_v62  ;;  %v1479_v39 = vadd.f32 %v1478_v46, %v1474_v54  ;;  %v1440_v1 = vand.u32 2147483648, %v3579_v62 }
 0x19f   : > { %v1448_v48 = vmul.f32 %v1429_v0, %v3574_v24  ;;  %v1475_v47 = vmul.f32 %v3539_v17, %v1447_v40  ;;  %v1541_v10 = vmul.f32 %v1533_v21, %v1533_v21  ;;  %vm1439_vm2 = vcmp.eq.f32.partialorder %v3579_v62, 0.0  ;;  %v1796_v18 = vpop.permute.xlu1 %1795 }
 0x1a0   : > { %v1438_v51 = vsel %vm1437_vm1, %v3579_v62, %v1436_v25  ;;  %v1571_v8 = vsub.f32 %v1562_v14, %v2723_v37  ;;  %v3704_v27 = vadd.f32 %v3619_v20, %v1540_v60  ;;  %v1539_v24 = vsub.f32 %v3617_v32, %v2731_v45 }
 0x1a1   : > { %v1441_v53 = vsel %vm1439_vm2, %v1440_v1, %v1438_v51  ;;  %v1476_v58 = vmul.f32 %v3517_v4, %v1448_v48  ;;  %v1488_v7 = vadd.f32 %v1487_v5, %v1475_v47  ;;  %v1535_v17 = vsub.f32 %v3551_v13, %v2731_v45 }
 0x1a2   : > { %v1449_v35 = vmul.f32 %v1441_v53, %v3579_v62  ;;  %v1578_v63 = vmul.f32 %v1570_v41, %v1570_v41  ;;  %v1546_v6 = vmul.f32 %v1538_v19, %v1538_v19  ;;  %v1806_v15 = vsub.f32 %v1792_v29, %v2721_v36 }
 0x1a3   : > { %v1807_v14 = vsub.f32 %v1792_v29, %v2723_v37  ;;  %v1480_v20 = vadd.f32 %v1479_v39, %v1476_v58  ;;  %v3715_v16 = vadd.f32 %v3621_v57, %v1541_v10  ;;  %v1575_v38 = vmul.f32 %v3606_v31, %v3606_v31 }
 0x1a4   : > { %v1542_v32 = vmul.f32 %v3613_v43, %v3613_v43  ;;  %v1477_v13 = vmul.f32 %v3517_v4, %v1449_v35  ;;  %v1568_v62 = vsub.f32 %v3647_v9, %v2721_v36  ;;  %v1579_v3 = vmul.f32 %v1571_v8, %v1571_v8  ;;  %v1767_v49 = vpop.permute.xlu2 %1766 }
 0x1a5   : > { %v1481_v26 = vrot.slane %v1480_v20, 4  ;;  %v1547_v56 = vmul.f32 %v1539_v24, %v1539_v24  ;;  %2334 = vrsqrt.f32 %v3704_v27  ;;  %v1543_v23 = vmul.f32 %v1535_v17, %v1535_v17 }
 0x1a6   : > { %v1489_v57 = vadd.f32 %v1488_v7, %v1477_v13  ;;  %v3725_v28 = vadd.f32 %v1578_v63, %v1546_v6  ;;  %v1569_v31 = vsub.f32 %v3647_v9, %v2723_v37  ;;  %v3729_v43 = vmul.f32 %v1806_v15, %v1806_v15 }
 0x1a7   : > { %v3731_v4 = vmul.f32 %v1807_v14, %v1807_v14  ;;  %v1482_v52 = vadd.f32 %v1481_v26, %v1480_v20  ;;  %2336 = vrsqrt.f32 %v3715_v16  ;;  %v3735_v46 = vadd.f32 %v3608_v2, %v1542_v32 }
 0x1a8   : > { %v1810_v29 = vsub.f32 %v1800_v12, %v2721_v36  ;;  %v1490_v11 = vrot.slane %v1489_v57, 4  ;;  %v1576_v34 = vmul.f32 %v1568_v62, %v1568_v62  ;;  %v1811_v21 = vsub.f32 %v1800_v12, %v2723_v37 }
 0x1a9   : > { %v1483_v30 = vrot.slane %v1482_v52, 2  ;;  %v3739_v9 = vadd.f32 %v1579_v3, %v1547_v56  ;;  %v1808_v22 = vsub.f32 %v1796_v18, %v2721_v36  ;;  %v3742_v54 = vadd.f32 %v1575_v38, %v1543_v23 }
 0x1aa   : > { %v1491_v60 = vadd.f32 %v1490_v11, %v1489_v57  ;;  %v1577_v50 = vmul.f32 %v1569_v31, %v1569_v31  ;;  %2338 = vrsqrt.f32 %v3725_v28  ;;  %v1776_v5 = vsub.f32 %v3691_v33, %v2729_v44 }
 0x1ab   : > { %v2335_v2 = vpop.eup %2334  ;;  %v1484_v40 = vadd.f32 %v1483_v30, %v1482_v52  ;;  %v1778_v41 = vsub.f32 %v1767_v49, %v2729_v44  ;;  %v1779_v0 = vsub.f32 %v1767_v49, %v2731_v45  ;;  %v1818_v25 = vmul.f32 %v1810_v29, %v1810_v29 }
 0x1ac   : > { %v1492_v39 = vrot.slane %v1491_v60, 2  ;;  %v3750_v19 = vadd.f32 %v1576_v34, %v3589_v55  ;;  %v1589_v1 = vmul.f32 %v2335_v2, %v3704_v27  ;;  %v1819_v47 = vmul.f32 %v1811_v21, %v1811_v21 }
 0x1ad   : > { %v2337_v48 = vpop.eup %2336  ;;  %v1777_v10 = vsub.f32 %v3691_v33, %v2731_v45  ;;  %v1816_v51 = vmul.f32 %v1808_v22, %v1808_v22  ;;  %2340 = vrsqrt.f32 %v3739_v9  ;;  %v3757_v53 = vadd.f32 %v1577_v50, %v3596_v59 }
 0x1ae   : > { %v1493_v8 = vadd.f32 %v1492_v39, %v1491_v60  ;;  %v1590_v58 = vmul.f32 %v2335_v2, %v1589_v1  ;;  %v1601_v7 = vmul.f32 %v2337_v48, %v3715_v16  ;;  %v1485_v24 = vrot.slane %v1484_v40, 1 }
 0x1af   : > { %v1784_v55 = vmul.f32 %v1776_v5, %v1776_v5  ;;  %v1786_v17 = vmul.f32 %v1778_v41, %v1778_v41  ;;  %v1787_v35 = vmul.f32 %v1779_v0, %v1779_v0  ;;  %2342 = vrsqrt.f32 %v3750_v19 }
 0x1b0   : > { %v2339_v63 = vpop.eup %2338  ;;  %v1494_v6 = vrot.slane %v1493_v8, 1  ;;  %v1591_v15 = vmul.f32 0.5, %v1590_v58  ;;  %v1602_v14 = vmul.f32 %v2337_v48, %v1601_v7  ;;  %v1774_v33 = vsub.f32 %v3686_v42, %v2729_v44 }
 0x1b1   : > { %v1775_v59 = vsub.f32 %v3686_v42, %v2731_v45  ;;  %v3765_v20 = vadd.f32 %v1816_v51, %v1784_v55  ;;  %v1661_v38 = vmul.f32 %v2339_v63, %v3725_v28  ;;  %2344 = vrsqrt.f32 %v3757_v53 }
 0x1b2   : > { %v1495_v32 = vadd.f32 %v1494_v6, %v1493_v8  ;;  %v1592_v13 = vsub.f32 1.5, %v1591_v15  ;;  %v1603_v62 = vmul.f32 0.5, %v1602_v14  ;;  %v1785_v26 = vmul.f32 %v1777_v10, %v1777_v10  ;;  %v1804_v8 = vpop.permute.xlu2 %1803 }
 0x1b3   : > { %v2341_v12 = vpop.eup %2340  ;;  %v3769_v3 = vadd.f32 %v1818_v25, %v1786_v17  ;;  %v3771_v56 = vadd.f32 %v1819_v47, %v1787_v35  ;;  %v1662_v23 = vmul.f32 %v2339_v63, %v1661_v38  ;;  %v1486_v57 = vadd.f32 %v1485_v24, %v1484_v40 }
 0x1b4   : > { %v1498_v31 = vrot.slane %v1495_v32, 6  ;;  %v1809_v42 = vsub.f32 %v1796_v18, %v2723_v37  ;;  %v1673_v52 = vmul.f32 %v2341_v12, %v3739_v9  ;;  %v1782_v29 = vmul.f32 %v1774_v33, %v1774_v33 }
 0x1b5   : > { %v1604_v11 = vsub.f32 1.5, %v1603_v62  ;;  %v1663_v49 = vmul.f32 0.5, %v1662_v23  ;;  %2346 = vrsqrt.f32 %v3765_v20  ;;  %v2343_v34 = vpop.eup %2342  ;;  %v1783_v30 = vmul.f32 %v1775_v59, %v1775_v59 }
 0x1b6   : > { %v1499_v21 = vsel %vm530_vm8, %v1486_v57, %v1498_v31  ;;  %v1593_v22 = vmul.f32 %v2335_v2, %v1592_v13  ;;  %v1674_v60 = vmul.f32 %v2341_v12, %v1673_v52  ;;  %vm1595_vm3 = vcmp.eq.f32.partialorder %v3704_v27, inf  ;;  %v1695_v13 = vpop.permute.xlu0 %1694 }
 0x1b7   : > { %v3778_v50 = vadd.f32 %v1499_v21, %v3582_v61  ;;  %v1664_v40 = vsub.f32 1.5, %v1663_v49  ;;  %v1637_v18 = vmul.f32 %v2343_v34, %v3750_v19  ;;  %v3782_v5 = vpop.eup %2344  ;;  %vm1597_vm4 = vcmp.eq.f32.partialorder %v3704_v27, 0.0 }
 0x1b8   : > { %v1598_v41 = vand.u32 2147483648, %v3704_v27  ;;  %v1817_v0 = vmul.f32 %v1809_v42, %v1809_v42  ;;  %v1675_v25 = vmul.f32 0.5, %v1674_v60  ;;  %v1605_v39 = vmul.f32 %v2337_v48, %v1604_v11 }
 0x1b9   : > { %v1665_v1 = vmul.f32 %v2339_v63, %v1664_v40  ;;  %v1638_v2 = vmul.f32 %v2343_v34, %v1637_v18  ;;  %v1649_v61 = vmul.f32 %v3782_v5, %v3757_v53  ;;  %v3789_v47 = vadd.f32 %v3729_v43, %v1782_v29 }
 0x1ba   : > { %v3792_v10 = vadd.f32 %v3731_v4, %v1783_v30  ;;  %v1594_v51 = vmul.f32 %v1593_v22, %v3704_v27  ;;  %v1676_v58 = vsub.f32 1.5, %v1675_v25  ;;  %v1812_v24 = vsub.f32 %v1804_v8, %v2721_v36  ;;  %v1772_v36 = vpop.permute.xlu1 %1771 }
 0x1bb   : > { %v2347_v7 = vpop.eup %2346  ;;  %v1813_v48 = vsub.f32 %v1804_v8, %v2723_v37  ;;  %v1639_v55 = vmul.f32 0.5, %v1638_v2  ;;  %v1650_v17 = vmul.f32 %v3782_v5, %v1649_v61  ;;  %vm1607_vm5 = vcmp.eq.f32.partialorder %v3715_v16, inf }
 0x1bc   : > { %vm1609_vm6 = vcmp.eq.f32.partialorder %v3715_v16, 0.0  ;;  %v1610_v43 = vand.u32 2147483648, %v3715_v16  ;;  %v3801_v4 = vadd.f32 %v1817_v0, %v1785_v26  ;;  %v1606_v35 = vmul.f32 %v1605_v39, %v3715_v16 }
 0x1bd   : > { %v1666_v63 = vmul.f32 %v1665_v1, %v3725_v28  ;;  %vm1667_vm7 = vcmp.eq.f32.partialorder %v3725_v28, inf  ;;  %v1855_v37 = vmul.f32 %v2347_v7, %v3765_v20  ;;  %v1596_v6 = vsel %vm1595_vm3, %v3704_v27, %v1594_v51 }
 0x1be   : > { %v1677_v15 = vmul.f32 %v2341_v12, %v1676_v58  ;;  %v1640_v14 = vsub.f32 1.5, %v1639_v55  ;;  %v1651_v33 = vmul.f32 0.5, %v1650_v17  ;;  %v1820_v59 = vmul.f32 %v1812_v24, %v1812_v24  ;;  %v1710_v58 = vpop.permute.xlu0 %1709 }
 0x1bf   : > { %v1821_v38 = vmul.f32 %v1813_v48, %v1813_v48  ;;  %vm1669_vm9 = vcmp.eq.f32.partialorder %v3725_v28, 0.0  ;;  %v1856_v32 = vmul.f32 %v2347_v7, %v1855_v37  ;;  %v1670_v62 = vand.u32 2147483648, %v3725_v28 }
 0x1c0   : > { %vm1679_vm10 = vcmp.eq.f32.partialorder %v3739_v9, inf  ;;  %v1780_v26 = vsub.f32 %v1772_v36, %v2729_v44  ;;  %2348 = vrsqrt.f32 %v3801_v4  ;;  %v1599_v23 = vsel %vm1597_vm4, %v1598_v41, %v1596_v6 }
 0x1c1   : > { %v1608_v12 = vsel %vm1607_vm5, %v3715_v16, %v1606_v35  ;;  %v1668_v57 = vsel %vm1667_vm7, %v3725_v28, %v1666_v63  ;;  %v1781_v31 = vsub.f32 %v1772_v36, %v2731_v45  ;;  %v1678_v42 = vmul.f32 %v1677_v15, %v3739_v9 }
 0x1c2   : > { %v1641_v52 = vmul.f32 %v2343_v34, %v1640_v14  ;;  %v1652_v29 = vsub.f32 1.5, %v1651_v33  ;;  %v1857_v44 = vmul.f32 0.5, %v1856_v32  ;;  %vm1681_vm11 = vcmp.eq.f32.partialorder %v3739_v9, 0.0 }
 0x1c3   : > { %v1682_v11 = vand.u32 2147483648, %v3739_v9  ;;  %vm1643_vm12 = vcmp.eq.f32.partialorder %v3750_v19, inf  ;;  %2350 = vrsqrt.f32 %v3735_v46  ;;  %v1611_v49 = vsel %vm1609_vm6, %v1610_v43, %v1608_v12 }
 0x1c4   : > { %v1684_v21 = vmul.f32 %v1599_v23, %v3704_v27  ;;  %v1788_v30 = vmul.f32 %v1780_v26, %v1780_v26  ;;  %v1858_v45 = vsub.f32 1.5, %v1857_v44  ;;  %v1671_v34 = vsel %vm1669_vm9, %v1670_v62, %v1668_v57 }
 0x1c5   : > { %vm1645_vm13 = vcmp.eq.f32.partialorder %v3750_v19, 0.0  ;;  %v1646_v22 = vand.u32 2147483648, %v3750_v19  ;;  %v1789_v60 = vmul.f32 %v1781_v31, %v1781_v31  ;;  %v1680_v18 = vsel %vm1679_vm10, %v3739_v9, %v1678_v42 }
 0x1c6   : > { %v2349_v40 = vpop.eup %2348  ;;  %v1642_v41 = vmul.f32 %v1641_v52, %v3750_v19  ;;  %v1653_v0 = vmul.f32 %v3782_v5, %v1652_v29  ;;  %2352 = vrsqrt.f32 %v3742_v54  ;;  %v1685_v27 = vmul.f32 %v1611_v49, %v3715_v16 }
 0x1c7   : > { %vm1655_vm14 = vcmp.eq.f32.partialorder %v3757_v53, inf  ;;  %v1859_v25 = vmul.f32 %v2347_v7, %v1858_v45  ;;  %v1867_v39 = vmul.f32 %v2349_v40, %v3801_v4  ;;  %v3845_v1 = vmul.f32 %v1695_v13, %v1684_v21 }
 0x1c8   : > { %vm1657_vm15 = vcmp.eq.f32.partialorder %v3757_v53, 0.0  ;;  %v1658_v2 = vand.u32 2147483648, %v3757_v53  ;;  %v3849_v61 = vadd.f32 %v1820_v59, %v1788_v30  ;;  %v1683_v5 = vsel %vm1681_vm11, %v1682_v11, %v1680_v18  ;;  %v1705_v59 = vpop.permute.xlu2 %1704 }
 0x1c9   : > { %v2351_v51 = vpop.eup %2350  ;;  %v1690_v8 = vmul.f32 %v1671_v34, %v3725_v28  ;;  %v1868_v16 = vmul.f32 %v2349_v40, %v1867_v39  ;;  %2354 = vrsqrt.f32 %v3769_v3  ;;  %v1644_v7 = vsel %vm1643_vm12, %v3750_v19, %v1642_v41 }
 0x1ca   : > { %v1654_v24 = vmul.f32 %v1653_v0, %v3757_v53  ;;  %v3859_v48 = vadd.f32 %v1821_v38, %v1789_v60  ;;  %v1613_v55 = vmul.f32 %v2351_v51, %v3735_v46  ;;  %v3862_v17 = vmul.f32 %v1695_v13, %v1685_v27  ;;  %v1700_v0 = vpop.permute.xlu1 %1699 }
 0x1cb   : > { %v1860_v43 = vmul.f32 %v1859_v25, %v3765_v20  ;;  %vm1861_vm0 = vcmp.eq.f32.partialorder %v3765_v20, inf  ;;  %v1869_v28 = vmul.f32 0.5, %v1868_v16  ;;  %v1691_v63 = vmul.f32 %v1683_v5, %v3739_v9 }
 0x1cc   : > { %v2353_v35 = vpop.eup %2352  ;;  %vm1863_vm1 = vcmp.eq.f32.partialorder %v3765_v20, 0.0  ;;  %v1864_v36 = vand.u32 2147483648, %v3765_v20  ;;  %v1614_v37 = vmul.f32 %v2351_v51, %v1613_v55  ;;  %v3869_v6 = vmul.f32 %v1710_v58, %v1690_v8 }
 0x1cd   : > { %v1647_v15 = vsel %vm1645_vm13, %v1646_v22, %v1644_v7  ;;  %v1870_v14 = vsub.f32 1.5, %v1869_v28  ;;  %v1625_v33 = vmul.f32 %v2353_v35, %v3742_v54  ;;  %v1656_v38 = vsel %vm1655_vm14, %v3757_v53, %v1654_v24 }
 0x1ce   : > { %vm1873_vm2 = vcmp.eq.f32.partialorder %v3801_v4, inf  ;;  %v1615_v9 = vmul.f32 0.5, %v1614_v37  ;;  %2356 = vrsqrt.f32 %v3771_v56  ;;  %v1862_v13 = vsel %vm1861_vm0, %v3765_v20, %v1860_v43 }
 0x1cf   : > { %v3879_v32 = vpop.eup %2354  ;;  %v1871_v62 = vmul.f32 %v2349_v40, %v1870_v14  ;;  %vm1875_vm3 = vcmp.eq.f32.partialorder %v3801_v4, 0.0  ;;  %v1626_v26 = vmul.f32 %v2353_v35, %v1625_v33  ;;  %v3885_v23 = vmul.f32 %v1710_v58, %v1691_v63 }
 0x1d0   : > { %v1688_v12 = vmul.f32 %v1647_v15, %v3750_v19  ;;  %v1876_v57 = vand.u32 2147483648, %v3801_v4  ;;  %v1616_v31 = vsub.f32 1.5, %v1615_v9  ;;  %v1659_v42 = vsel %vm1657_vm15, %v1658_v2, %v1656_v38  ;;  %v1942_v5 = vpop.permute.xlu2 %1941 }
 0x1d1   : > { %v1872_v52 = vmul.f32 %v1871_v62, %v3801_v4  ;;  %vm1619_vm4 = vcmp.eq.f32.partialorder %v3735_v46, inf  ;;  %v1627_v29 = vmul.f32 0.5, %v1626_v26  ;;  %v1865_v44 = vsel %vm1863_vm1, %v1864_v36, %v1862_v13 }
 0x1d2   : > { %v1617_v11 = vmul.f32 %v2351_v51, %v1616_v31  ;;  %vm1621_vm5 = vcmp.eq.f32.partialorder %v3735_v46, 0.0  ;;  %v1879_v19 = vmul.f32 %v3879_v32, %v3769_v3  ;;  %v1622_v21 = vand.u32 2147483648, %v3735_v46 }
 0x1d3   : > { %v1874_v49 = vsel %vm1873_vm2, %v3801_v4, %v1872_v52  ;;  %v1628_v30 = vsub.f32 1.5, %v1627_v29  ;;  %2358 = vrsqrt.f32 %v3849_v61  ;;  %v1689_v34 = vmul.f32 %v1659_v42, %v3757_v53 }
 0x1d4   : > { %v3903_v45 = vpop.eup %2356  ;;  %v1716_v22 = vmul.f32 %v1705_v59, %v1688_v12  ;;  %v1618_v60 = vmul.f32 %v1617_v11, %v3735_v46  ;;  %vm1631_vm6 = vcmp.eq.f32.partialorder %v3742_v54, inf  ;;  %v1928_v40 = vmul.f32 %v1865_v44, %v3765_v20 }
 0x1d5   : > { %v1629_v18 = vmul.f32 %v2353_v35, %v1628_v30  ;;  %vm1633_vm7 = vcmp.eq.f32.partialorder %v3742_v54, 0.0  ;;  %2360 = vrsqrt.f32 %v3859_v48  ;;  %v1877_v41 = vsel %vm1875_vm3, %v1876_v57, %v1874_v49 }
 0x1d6   : > { %v1620_v53 = vsel %vm1619_vm4, %v3735_v46, %v1618_v60  ;;  %2362 = vrsqrt.f32 %v3789_v47  ;;  %v1880_v27 = vmul.f32 %v3879_v32, %v1879_v19  ;;  %v1634_v39 = vand.u32 2147483648, %v3742_v54 }
 0x1d7   : > { %v1623_v20 = vsel %vm1621_vm5, %v1622_v21, %v1620_v53  ;;  %v1630_v25 = vmul.f32 %v1629_v18, %v3742_v54  ;;  %v1891_v2 = vmul.f32 %v3903_v45, %v3771_v56  ;;  %v1717_v51 = vmul.f32 %v1705_v59, %v1689_v34  ;;  %v1937_v34 = vpop.permute.xlu1 %1936 }
 0x1d8   : > { %v1686_v8 = vmul.f32 %v1623_v20, %v3735_v46  ;;  %2364 = vrsqrt.f32 %v3792_v10  ;;  %v1888_v16 = vand.u32 2147483648, %v3769_v3  ;;  %v1929_v7 = vmul.f32 %v1877_v41, %v3801_v4 }
 0x1d9   : > { %v2359_v58 = vpop.eup %2358  ;;  %v3928_v24 = vmul.f32 %v1942_v5, %v1928_v40  ;;  %v1632_v55 = vsel %vm1631_vm6, %v3742_v54, %v1630_v25  ;;  %v1900_v43 = vand.u32 2147483648, %v3771_v56  ;;  %v1881_v63 = vmul.f32 0.5, %v1880_v27 }
 0x1da   : > { %v1635_v28 = vsel %vm1633_vm7, %v1634_v39, %v1632_v55  ;;  %v1714_v35 = vmul.f32 %v1700_v0, %v1686_v8  ;;  %v1903_v46 = vmul.f32 %v2359_v58, %v3849_v61  ;;  %v1912_v4 = vand.u32 2147483648, %v3849_v61 }
 0x1db   : > { %v2361_v36 = vpop.eup %2360  ;;  %v1687_v37 = vmul.f32 %v1635_v28, %v3742_v54  ;;  %v1924_v15 = vand.u32 2147483648, %v3859_v48  ;;  %v1892_v14 = vmul.f32 %v3903_v45, %v1891_v2  ;;  %v1882_v13 = vsub.f32 1.5, %v1881_v63 }
 0x1dc   : > { %v2363_v33 = vpop.eup %2362  ;;  %v1720_v59 = vadd.f32 %v1714_v35, %v3845_v1  ;;  %v1904_v38 = vmul.f32 %v2359_v58, %v1903_v46  ;;  %v1915_v9 = vmul.f32 %v2361_v36, %v3859_v48  ;;  %vm1885_vm9 = vcmp.eq.f32.partialorder %v3769_v3, inf }
 0x1dd   : > { %v3944_v62 = vmul.f32 %v1942_v5, %v1929_v7  ;;  %v1715_v26 = vmul.f32 %v1700_v0, %v1687_v37  ;;  %vm1909_vm10 = vcmp.eq.f32.partialorder %v3849_v61, inf  ;;  %v1831_v54 = vmul.f32 %v2363_v33, %v3789_v47 }
 0x1de   : > { %v1893_v12 = vmul.f32 0.5, %v1892_v14  ;;  %vm1897_vm11 = vcmp.eq.f32.partialorder %v3771_v56, inf  ;;  %v2365_v57 = vpop.eup %2364  ;;  %v1721_v31 = vadd.f32 %v1720_v59, %v1716_v22  ;;  %v1905_v42 = vmul.f32 0.5, %v1904_v38 }
 0x1df   : > { %vm1911_vm12 = vcmp.eq.f32.partialorder %v3849_v61, 0.0  ;;  %v1916_v1 = vmul.f32 %v2361_v36, %v1915_v9  ;;  %v1883_v52 = vmul.f32 %v3879_v32, %v1882_v13  ;;  %v1729_v29 = vadd.f32 %v1715_v26, %v3862_v17 }
 0x1e0   : > { %vm1921_vm13 = vcmp.eq.f32.partialorder %v3859_v48, inf  ;;  %v1832_v44 = vmul.f32 %v2363_v33, %v1831_v54  ;;  %v1843_v11 = vmul.f32 %v2365_v57, %v3792_v10  ;;  %vm1887_vm14 = vcmp.eq.f32.partialorder %v3769_v3, 0.0  ;;  %v1947_v54 = vpop.permute.xlu1 %1946 }
 0x1e1   : > { %v1894_v19 = vsub.f32 1.5, %v1893_v12  ;;  %vm1899_vm15 = vcmp.eq.f32.partialorder %v3771_v56, 0.0  ;;  %v1722_v49 = vadd.f32 %v1721_v31, %v3869_v6  ;;  %v1906_v21 = vsub.f32 1.5, %v1905_v42 }
 0x1e2   : > { %v1917_v30 = vmul.f32 0.5, %v1916_v1  ;;  %vm1923_vm0 = vcmp.eq.f32.partialorder %v3859_v48, 0.0  ;;  %vm1837_vm1 = vcmp.eq.f32.partialorder %v3789_v47, inf  ;;  %v1884_v17 = vmul.f32 %v1883_v52, %v3769_v3 }
 0x1e3   : > { %v1730_v32 = vadd.f32 %v1729_v29, %v1717_v51  ;;  %v1833_v22 = vmul.f32 0.5, %v1832_v44  ;;  %vm1839_vm2 = vcmp.eq.f32.partialorder %v3789_v47, 0.0  ;;  %v1844_v60 = vmul.f32 %v2365_v57, %v1843_v11  ;;  %v1952_v44 = vpop.permute.xlu2 %1951 }
 0x1e4   : > { %v1895_v40 = vmul.f32 %v3903_v45, %v1894_v19  ;;  %v1723_v18 = vrot.slane %v1722_v49, 4  ;;  %v1907_v41 = vmul.f32 %v2359_v58, %v1906_v21  ;;  %v1918_v0 = vsub.f32 1.5, %v1917_v30 }
 0x1e5   : > { %v1840_v6 = vand.u32 2147483648, %v3789_v47  ;;  %v1731_v53 = vadd.f32 %v1730_v32, %v3885_v23  ;;  %v1834_v27 = vsub.f32 1.5, %v1833_v22  ;;  %v1845_v20 = vmul.f32 0.5, %v1844_v60 }
 0x1e6   : > { %vm1849_vm3 = vcmp.eq.f32.partialorder %v3792_v10, inf  ;;  %v1724_v25 = vadd.f32 %v1723_v18, %v1722_v49  ;;  %v1908_v39 = vmul.f32 %v1907_v41, %v3849_v61  ;;  %v1919_v2 = vmul.f32 %v2361_v36, %v1918_v0 }
 0x1e7   : > { %v1896_v51 = vmul.f32 %v1895_v40, %v3771_v56  ;;  %v1732_v5 = vrot.slane %v1731_v53, 4  ;;  %v1835_v8 = vmul.f32 %v2363_v33, %v1834_v27  ;;  %v1846_v45 = vsub.f32 1.5, %v1845_v20 }
 0x1e8   : > { %v1886_v58 = vsel %vm1885_vm9, %v3769_v3, %v1884_v17  ;;  %v1725_v7 = vrot.slane %v1724_v25, 2  ;;  %v1910_v23 = vsel %vm1909_vm10, %v3849_v61, %v1908_v39  ;;  %v1920_v55 = vmul.f32 %v1919_v2, %v3859_v48 }
 0x1e9   : > { %v1898_v28 = vsel %vm1897_vm11, %v3771_v56, %v1896_v51  ;;  %v1733_v35 = vadd.f32 %v1732_v5, %v1731_v53  ;;  %v1913_v46 = vsel %vm1911_vm12, %v1912_v4, %v1910_v23  ;;  %v1836_v63 = vmul.f32 %v1835_v8, %v3789_v47 }
 0x1ea   : > { %v1847_v36 = vmul.f32 %v2365_v57, %v1846_v45  ;;  %v1726_v37 = vadd.f32 %v1725_v7, %v1724_v25  ;;  %v1922_v14 = vsel %vm1921_vm13, %v3859_v48, %v1920_v55  ;;  %v1889_v33 = vsel %vm1887_vm14, %v1888_v16, %v1886_v58 }
 0x1eb   : > { %v1901_v59 = vsel %vm1899_vm15, %v1900_v43, %v1898_v28  ;;  %v1734_v38 = vrot.slane %v1733_v35, 2  ;;  %v1925_v4 = vsel %vm1923_vm0, %v1924_v15, %v1922_v14  ;;  %v1838_v9 = vsel %vm1837_vm1, %v3789_v47, %v1836_v63 }
 0x1ec   : > { %v1848_v13 = vmul.f32 %v1847_v36, %v3792_v10  ;;  %v1932_v26 = vmul.f32 %v1913_v46, %v3849_v61  ;;  %v1841_v16 = vsel %vm1839_vm2, %v1840_v6, %v1838_v9  ;;  %vm1851_vm4 = vcmp.eq.f32.partialorder %v3792_v10, 0.0 }
 0x1ed   : > { %v1852_v43 = vand.u32 2147483648, %v3792_v10  ;;  %v1735_v12 = vadd.f32 %v1734_v38, %v1733_v35  ;;  %v1926_v57 = vmul.f32 %v1841_v16, %v3789_v47  ;;  %v1930_v31 = vmul.f32 %v1889_v33, %v3769_v3 }
 0x1ee   : > { %v1850_v15 = vsel %vm1849_vm3, %v3792_v10, %v1848_v13  ;;  %v1727_v42 = vrot.slane %v1726_v37, 1  ;;  %v1933_v61 = vmul.f32 %v1925_v4, %v3859_v48  ;;  %v1931_v52 = vmul.f32 %v1901_v59, %v3771_v56 }
 0x1ef   : > { %v1853_v1 = vsel %vm1851_vm4, %v1852_v43, %v1850_v15  ;;  %v1736_v29 = vrot.slane %v1735_v12, 1  ;;  %v1954_v19 = vmul.f32 %v1937_v34, %v1926_v57  ;;  %v1958_v49 = vmul.f32 %v1947_v54, %v1930_v31 }
 0x1f0   : > { %v1927_v11 = vmul.f32 %v1853_v1, %v3792_v10  ;;  %v1960_v21 = vmul.f32 %v1952_v44, %v1932_v26  ;;  %v1959_v47 = vmul.f32 %v1947_v54, %v1931_v52  ;;  %v1728_v22 = vadd.f32 %v1727_v42, %v1726_v37 }
 0x1f1   : > { %v1737_v30 = vadd.f32 %v1736_v29, %v1735_v12  ;;  %v1962_v32 = vadd.f32 %v3928_v24, %v1954_v19  ;;  %v1961_v60 = vmul.f32 %v1952_v44, %v1933_v61  ;;  %v1996_v45 = vlaneseq }
 0x1f2   : > { %v1955_v17 = vmul.f32 %v1937_v34, %v1927_v11  ;;  %vm1990_vm5 = vcmask 1040384   ;;  %vm1992_vm6 = vcmask 1042434  }
 0x1f3   : > { %v1740_v3 = vrot.slane %v1737_v30, 6  ;;  %v1963_v40 = vadd.f32 %v1962_v32, %v1958_v49  ;;  %vm1998_vm7 = vcmp.lt.s32.totalorder %v1996_v45, 256 }
 0x1f4   : > { %v1971_v48 = vadd.f32 %v3944_v62, %v1955_v17 }
 0x1f5   : > { %v1741_v56 = vsel %vm530_vm8, %v1728_v22, %v1740_v3  ;;  %v1964_v18 = vadd.f32 %v1963_v40, %v1960_v21 }
 0x1f6   : > { %v1972_v10 = vadd.f32 %v1971_v48, %v1959_v47  ;;  %v1743_v41 = vadd.f32 %v1741_v56, %v3778_v50 }
 0x1f7   : > { %v1965_v0 = vrot.slane %v1964_v18, 4 }
 0x1f8   : > { %v1973_v6 = vadd.f32 %v1972_v10, %v1961_v60 }
 0x1f9   : > { %v1966_v34 = vadd.f32 %v1965_v0, %v1964_v18 }
 0x1fa   : > { %v1974_v53 = vrot.slane %v1973_v6, 4 }
 0x1fb   : > { %v1967_v24 = vrot.slane %v1966_v34, 2 }
 0x1fc   : > { %v1975_v27 = vadd.f32 %v1974_v53, %v1973_v6 }
 0x1fd   : > { %v1968_v20 = vadd.f32 %v1967_v24, %v1966_v34 }
 0x1fe   : > { %v1976_v25 = vrot.slane %v1975_v27, 2 }
 0x1ff   : > { %v1969_v2 = vrot.slane %v1968_v20, 1 }
 0x200   : > { %v1977_v39 = vadd.f32 %v1976_v25, %v1975_v27 }
 0x201   : > { %v1970_v5 = vadd.f32 %v1969_v2, %v1968_v20 }
 0x202   : > { %v1978_v62 = vrot.slane %v1977_v39, 1 }
 0x204   : > { %v1979_v51 = vadd.f32 %v1978_v62, %v1977_v39 }
 0x206   : > { %v1982_v8 = vrot.slane %v1979_v51, 6 }
 0x208   : > { %v1983_v50 = vsel %vm530_vm8, %v1970_v5, %v1982_v8 }
 0x209   : > { %v1985_v58 = vadd.f32 %v1983_v50, %v1743_v41 }
 0x20b   : > { %v1987_v7 = vrot.slane %v1985_v58, 1  ;;  %v1988_v23 = vrot.slane %v1985_v58, 2  ;;  %v1989_v55 = vrot.slane %v1985_v58, 3 }
 0x20d   : > { %v1991_v28 = vsel %vm1990_vm5, %v1985_v58, %v1987_v7  ;;  %v1993_v35 = vsel %vm1992_vm6, %v1988_v23, %v1989_v55 }
 0x20e   : > { %v1994_v46 = vsel %vm530_vm8, %v1991_v28, %v1993_v35 }
 0x20f   : > { %2000 = vst.msk [vmem:[%s262_s13] sm:$0x3] %vm1998_vm7, %v1994_v46 }
 0x210   : > { %2499 = shalt.err (!%p2496_p9)
}
 0x211   : > { %2155 = dma.vmem_to_hbm [thread:$0]  (%p2646_p13), %s2015_s14, 32, %s2017_s26, %s2002_s22  }
 0x212 PF: > { %s2028_s24 = sand.u32 1, %s2534_s15   ;;  %p4085_p10 = scmp.ge.s32.totalorder %s2546_s18, 2 }
 0x213   : > { %s2029_s5 = scalar_lea.sflag [#allocation4], %s2028_s24 }
 0x214   : > { %p2172_p11 = pnand %p4085_p10, %p2651_p4 }
 0x216   : > { %p2173_p0 = pneg %p2172_p11 }
 0x218   : > { %2529 = dma.done.wait (%p2173_p0), %s2029_s5, 32  }
 0x219   : > { %2531 = vsyncadd (%p2173_p0), %s2029_s5, 4294967264  ;;  %p19_p2 = scmp.ge.s32.totalorder %s2626_s12, 4   ;;  %s4086_s15 = smov %s2538_s16 }
 0x21a   : > { %s4087_s16 = smov %s2542_s17  ;;  %s4088_s17 = smov %s2638_s19 }
 0x21b   : > { %s4089_s18 = smov %s2626_s12  ;;  %21 = sbr.rel (!%p19_p2) target bundleno = 7 (0x7), region = 106 }
 0x220   :  { %2035 = vsyncpa [#allocation3], 1 }
 0x221   :  { %2037 = vsyncpa [#allocation3 + $0x1], 1 }
 0x222   :  { %2038 = vsyncpa [#allocation7], 1 }
 0x223   :  { %2039 = vsyncpa [#allocation4], 1 }
 0x224   :  { %2041 = vsyncpa [#allocation4 + $0x1], 1 }
 0x225   :  { %2042 = vsyncpa [#allocation5], 1 }
 0x226   :  { %2044 = vsyncpa [#allocation5 + $0x1], 1 }

</bundles_post_ra>
